<compile_context>
chip_gen: v7x
topology: tpu7x:2x2x1
jax: 0.10.0
libtpu: 0.0.40
codegen_flags: <defaults>
</compile_context>

<pallas_src>
import math
from functools import partial

import jax
import jax.numpy as jnp
from jax.experimental import pallas as pl
from jax.experimental.pallas import tpu as pltpu

# TODO(synk): string tokenization (BertTokenizer.batch_encode_plus) and loading the
# pretrained chinese-roberta weights have no Pallas equivalent; input_ids /
# attention_mask are supplied directly and weights are deterministically initialized.

LN_EPS = 1e-12
PARAM_DTYPE = jnp.bfloat16


def _vmem_limit_bytes():
    """Generation-aware scoped-VMEM cap (v4/v5e/v6e: 128 MiB phys, v7x: 64 MiB)."""
    try:
        kind = jax.devices()[0].device_kind.lower()
    except Exception:
        return 32 * 1024 * 1024
    if "v2" in kind or "v3" in kind:
        return 12 * 1024 * 1024
    if "v4" in kind or "v5" in kind or "v6" in kind:
        return 96 * 1024 * 1024
    return 48 * 1024 * 1024            # v7x / unknown: 64 MiB physical, stay under


VMEM_LIMIT = _vmem_limit_bytes()
VMEM_BUDGET = int(VMEM_LIMIT * 0.85)   # headroom for compiler temps
_TM_TARGETS = (512, 256, 128, 64, 32, 16)


def _pick_tile(dim, target, align):
    """Largest tile <= target that divides `dim` and is `align`-aligned, else `dim`."""
    if dim <= target:
        return dim
    t = (target // align) * align
    while t >= align:
        if dim % t == 0:
            return t
        t -= align
    return dim


def _choose_tm(M, need_bytes):
    """Largest 16-aligned row tile dividing M whose VMEM estimate fits the budget."""
    seen = set()
    for t in _TM_TARGETS:
        tm = _pick_tile(M, t, 16)      # 16-row alignment: bf16 packs 2 rows/sublane
        if tm in seen:
            continue
        seen.add(tm)
        if need_bytes(tm) <= VMEM_BUDGET:
            return tm
    return None


def _cparams(sem):
    return pltpu.CompilerParams(dimension_semantics=sem, vmem_limit_bytes=VMEM_LIMIT)


def _gelu(y):
    # TODO(synk): HF BERT uses exact erf-GELU; tanh approximation used here.
    c = math.sqrt(2.0 / math.pi)
    return 0.5 * y * (1.0 + jnp.tanh(c * (y + 0.044715 * y * y * y)))


def _ln_finish(y, g_ref, bb_ref, o_ref, eps):
    mean = jnp.mean(y, axis=-1, keepdims=True)
    var = jnp.mean(jnp.square(y - mean), axis=-1, keepdims=True)
    yn = (y - mean) * jax.lax.rsqrt(var + eps)
    o_ref[...] = (yn * g_ref[...].astype(jnp.float32)
                  + bb_ref[...].astype(jnp.float32)).astype(o_ref.dtype)


# ---------------------------------------------------------------------------
# Linear (+ bias, optional GELU): weight-resident fast path, K-tiled fallback
# ---------------------------------------------------------------------------

def _linear_wres_kernel(x_ref, w_ref, b_ref, o_ref, *, activation):
    y = jnp.dot(x_ref[...], w_ref[...], preferred_element_type=jnp.float32)
    y = y + b_ref[...].astype(jnp.float32)
    if activation == "gelu":
        y = _gelu(y)
    o_ref[...] = y.astype(o_ref.dtype)


def _linear_kernel(x_ref, w_ref, b_ref, o_ref, acc_ref, *, activation):
    k = pl.program_id(2)

    @pl.when(k == 0)
    def _():
        acc_ref[...] = jnp.zeros_like(acc_ref)

    acc_ref[...] += jnp.dot(x_ref[...], w_ref[...], preferred_element_type=jnp.float32)

    @pl.when(k == pl.num_programs(2) - 1)
    def _():
        y = acc_ref[...] + b_ref[...].astype(jnp.float32)
        if activation == "gelu":
            y = _gelu(y)
        o_ref[...] = y.astype(o_ref.dtype)


def linear(x, w, b, activation=None, out_dtype=None):
    M, K = x.shape
    N = w.shape[1]
    out_dtype = out_dtype if out_dtype is not None else x.dtype
    xi = jnp.dtype(x.dtype).itemsize
    wi = jnp.dtype(w.dtype).itemsize
    ob = jnp.dtype(out_dtype).itemsize

    def need(tm):  # double-buffered operands + f32 epilogue temp
        return (2 * tm * K * xi + 2 * K * N * wi + 2 * N * wi
                + 2 * tm * N * ob + tm * N * 4)

    tm = _choose_tm(M, need)
    if tm is not None:
        # Full weight resident in VMEM, single pass over K, grid over rows only.
        return pl.pallas_call(
            partial(_linear_wres_kernel, activation=activation),
            out_shape=jax.ShapeDtypeStruct((M, N), out_dtype),
            grid=(M // tm,),
            in_specs=[
                pl.BlockSpec((tm, K), lambda i: (i, 0)),
                pl.BlockSpec((K, N), lambda i: (0, 0)),
                pl.BlockSpec((1, N), lambda i: (0, 0)),
            ],
            out_specs=pl.BlockSpec((tm, N), lambda i: (i, 0)),
            compiler_params=_cparams(("parallel",)),
        )(x, w, b.reshape(1, N))

    # Fallback: (M, N, K)-tiled accumulation for weights too big for VMEM.
    tm = _pick_tile(M, 512, 16)
    tn = _pick_tile(N, 512, 128)
    tk = _pick_tile(K, 512, 128)
    return pl.pallas_call(
        partial(_linear_kernel, activation=activation),
        out_shape=jax.ShapeDtypeStruct((M, N), out_dtype),
        grid=(M // tm, N // tn, K // tk),
        in_specs=[
            pl.BlockSpec((tm, tk), lambda i, j, k: (i, k)),
            pl.BlockSpec((tk, tn), lambda i, j, k: (k, j)),
            pl.BlockSpec((1, tn), lambda i, j, k: (0, j)),
        ],
        out_specs=pl.BlockSpec((tm, tn), lambda i, j, k: (i, j)),
        scratch_shapes=[pltpu.VMEM((tm, tn), jnp.float32)],
        compiler_params=_cparams(("parallel", "parallel", "arbitrary")),
    )(x, w, b.reshape(1, N))


# ---------------------------------------------------------------------------
# Linear + bias + residual-add + LayerNorm (fused epilogue)
# ---------------------------------------------------------------------------

def _linear_add_ln_wres_kernel(x_ref, w_ref, b_ref, r_ref, g_ref, bb_ref, o_ref, *, eps):
    y = jnp.dot(x_ref[...], w_ref[...], preferred_element_type=jnp.float32)
    y = y + b_ref[...].astype(jnp.float32) + r_ref[...].astype(jnp.float32)
    _ln_finish(y, g_ref, bb_ref, o_ref, eps)


def _linear_add_ln_kernel(x_ref, w_ref, b_ref, r_ref, g_ref, bb_ref, o_ref,
                          acc_ref, *, eps):
    k = pl.program_id(1)

    @pl.when(k == 0)
    def _():
        acc_ref[...] = jnp.zeros_like(acc_ref)

    acc_ref[...] += jnp.dot(x_ref[...], w_ref[...], preferred_element_type=jnp.float32)

    @pl.when(k == pl.num_programs(1) - 1)
    def _():
        y = (acc_ref[...] + b_ref[...].astype(jnp.float32)
             + r_ref[...].astype(jnp.float32))
        _ln_finish(y, g_ref, bb_ref, o_ref, eps)


def linear_add_layernorm(x, w, b, residual, gamma, beta, eps=LN_EPS):
    M, K = x.shape
    N = w.shape[1]                       # full N per block (LN reduces over N)

    def need(tm):
        return (2 * tm * K * 2 + 2 * K * N * 2 + 2 * tm * N * 2   # x, w, residual
                + 2 * tm * N * 2 + 2 * tm * N * 4 + 6 * N * 2)    # out + f32 temps

    tm = _choose_tm(M, need)
    if tm is not None:
        return pl.pallas_call(
            partial(_linear_add_ln_wres_kernel, eps=eps),
            out_shape=jax.ShapeDtypeStruct((M, N), x.dtype),
            grid=(M // tm,),
            in_specs=[
                pl.BlockSpec((tm, K), lambda i: (i, 0)),
                pl.BlockSpec((K, N), lambda i: (0, 0)),
                pl.BlockSpec((1, N), lambda i: (0, 0)),
                pl.BlockSpec((tm, N), lambda i: (i, 0)),
                pl.BlockSpec((1, N), lambda i: (0, 0)),
                pl.BlockSpec((1, N), lambda i: (0, 0)),
            ],
            out_specs=pl.BlockSpec((tm, N), lambda i: (i, 0)),
            compiler_params=_cparams(("parallel",)),
        )(x, w, b.reshape(1, N), residual, gamma.reshape(1, N), beta.reshape(1, N))

    tm = _pick_tile(M, 512, 16)
    tk = _pick_tile(K, 512, 128)
    return pl.pallas_call(
        partial(_linear_add_ln_kernel, eps=eps),
        out_shape=jax.ShapeDtypeStruct((M, N), x.dtype),
        grid=(M // tm, K // tk),
        in_specs=[
            pl.BlockSpec((tm, tk), lambda i, k: (i, k)),
            pl.BlockSpec((tk, N), lambda i, k: (k, 0)),
            pl.BlockSpec((1, N), lambda i, k: (0, 0)),
            pl.BlockSpec((tm, N), lambda i, k: (i, 0)),
            pl.BlockSpec((1, N), lambda i, k: (0, 0)),
            pl.BlockSpec((1, N), lambda i, k: (0, 0)),
        ],
        out_specs=pl.BlockSpec((tm, N), lambda i, k: (i, 0)),
        scratch_shapes=[pltpu.VMEM((tm, N), jnp.float32)],
        compiler_params=_cparams(("parallel", "arbitrary")),
    )(x, w, b.reshape(1, N), residual, gamma.reshape(1, N), beta.reshape(1, N))


# ---------------------------------------------------------------------------
# Fused FFN: up-proj + GELU + down-proj + residual-add + LayerNorm in one kernel
# (the (M, intermediate) activation never touches HBM; both weights VMEM-resident)
# ---------------------------------------------------------------------------

def _ffn_kernel(x_ref, w1_ref, b1_ref, w2_ref, b2_ref, g_ref, bb_ref, o_ref, *, eps):
    x = x_ref[...]                                                       # (tm, H) bf16
    h = jnp.dot(x, w1_ref[...], preferred_element_type=jnp.float32)
    h = _gelu(h + b1_ref[...].astype(jnp.float32))
    y = jnp.dot(h.astype(w2_ref.dtype), w2_ref[...],                    # bf16 back to MXU
                preferred_element_type=jnp.float32)
    y = y + b2_ref[...].astype(jnp.float32) + x.astype(jnp.float32)      # residual = x
    _ln_finish(y, g_ref, bb_ref, o_ref, eps)


def ffn_block(x, w1, b1, w2, b2, gamma, beta, eps=LN_EPS):
    M, H = x.shape
    inter = w1.shape[1]

    def need(tm):
        return (2 * tm * H * 2 + 2 * H * inter * 2 + 2 * inter * H * 2   # x, w1, w2
                + 2 * tm * H * 2                                          # out
                + tm * inter * 4 + tm * inter * 2 + 2 * tm * H * 4        # h f32/bf16, y
                + 4 * (inter + 4 * H) * 2)                                # biases / ln

    tm = _choose_tm(M, need)
    if tm is None:
        # Fall back to two kernels (HBM round-trip of the intermediate).
        h = linear(x, w1, b1, activation="gelu")
        return linear_add_layernorm(h, w2, b2, x, gamma, beta, eps)

    return pl.pallas_call(
        partial(_ffn_kernel, eps=eps),
        out_shape=jax.ShapeDtypeStruct((M, H), x.dtype),
        grid=(M // tm,),
        in_specs=[
            pl.BlockSpec((tm, H), lambda i: (i, 0)),
            pl.BlockSpec((H, inter), lambda i: (0, 0)),
            pl.BlockSpec((1, inter), lambda i: (0, 0)),
            pl.BlockSpec((inter, H), lambda i: (0, 0)),
            pl.BlockSpec((1, H), lambda i: (0, 0)),
            pl.BlockSpec((1, H), lambda i: (0, 0)),
            pl.BlockSpec((1, H), lambda i: (0, 0)),
        ],
        out_specs=pl.BlockSpec((tm, H), lambda i: (i, 0)),
        compiler_params=_cparams(("parallel",)),
    )(x, w1, b1.reshape(1, inter), w2, b2.reshape(1, H),
      gamma.reshape(1, H), beta.reshape(1, H))


# ---------------------------------------------------------------------------
# Standalone LayerNorm (embeddings; no residual read)
# ---------------------------------------------------------------------------

def _layernorm_kernel(x_ref, g_ref, b_ref, o_ref, *, eps):
    _ln_finish(x_ref[...].astype(jnp.float32), g_ref, b_ref, o_ref, eps)


def layernorm(x, gamma, beta, eps=LN_EPS):
    M, H = x.shape
    tm = _pick_tile(M, 512, 16)
    return pl.pallas_call(
        partial(_layernorm_kernel, eps=eps),
        out_shape=jax.ShapeDtypeStruct((M, H), x.dtype),
        grid=(M // tm,),
        in_specs=[
            pl.BlockSpec((tm, H), lambda i: (i, 0)),
            pl.BlockSpec((1, H), lambda i: (0, 0)),
            pl.BlockSpec((1, H), lambda i: (0, 0)),
        ],
        out_specs=pl.BlockSpec((tm, H), lambda i: (i, 0)),
        compiler_params=_cparams(("parallel",)),
    )(x, gamma.reshape(1, H), beta.reshape(1, H))


# ---------------------------------------------------------------------------
# Fused multi-head self-attention.
# grid = (batch, q-row tiles): both parallel (feeds both v7x TensorCores even at
# tiny batch) and the q-tile bounds the per-iteration live set.  QKV stays bf16
# into the MXU (f32 accumulation); scores via dot_general (no k transpose);
# softmax scale applied to q; probabilities cast to bf16 for the P.V matmul;
# per-head contexts concatenated in VMEM and written with one lane-dense store.
# ---------------------------------------------------------------------------

def _attention_kernel(qkv_ref, mask_ref, o_ref, *, num_heads, head_dim, tq, scale):
    H = num_heads * head_dim
    q0 = pl.multiple_of(pl.program_id(1) * tq, tq)
    q_rows = qkv_ref[pl.ds(q0, tq), :]                     # (tq, 3H) bf16, no upcast
    m = mask_ref[...].astype(jnp.float32)                  # (1, S) additive key mask
    ctxs = []
    for h in range(num_heads):                             # static slices are free
        lo = h * head_dim
        q = q_rows[:, lo:lo + head_dim] * scale            # scale on (tq, dh), bf16
        k = qkv_ref[:, H + lo:H + lo + head_dim]           # (S, dh) bf16
        v = qkv_ref[:, 2 * H + lo:2 * H + lo + head_dim]   # (S, dh) bf16
        s = jax.lax.dot_general(q, k, (((1,), (1,)), ((), ())),
                                preferred_element_type=jnp.float32) + m   # (tq, S)
        p = jnp.exp(s - jnp.max(s, axis=-1, keepdims=True))
        p = p * pl.reciprocal(jnp.sum(p, axis=-1, keepdims=True), approx=True)
        ctxs.append(jnp.dot(p.astype(v.dtype), v,          # bf16 P.V, f32 acc
                            preferred_element_type=jnp.float32))
    # single lane-dense (tq, H) store instead of per-head 64-lane partial stores
    o_ref[...] = jnp.concatenate(ctxs, axis=-1).astype(o_ref.dtype)


def attention(qkv, mask_add, num_heads, head_dim):
    B, S, threeH = qkv.shape
    H = num_heads * head_dim
    tq = _pick_tile(S, 256, 16)
    return pl.pallas_call(
        partial(_attention_kernel, num_heads=num_heads, head_dim=head_dim,
                tq=tq, scale=1.0 / math.sqrt(head_dim)),
        out_shape=jax.ShapeDtypeStruct((B, S, H), qkv.dtype),
        grid=(B, S // tq),
        in_specs=[
            pl.BlockSpec((pl.Squeezed(), S, threeH), lambda b, qi: (b, 0, 0)),
            pl.BlockSpec((pl.Squeezed(), 1, S), lambda b, qi: (b, 0, 0)),
        ],
        out_specs=pl.BlockSpec((pl.Squeezed(), tq, H), lambda b, qi: (b, qi, 0)),
        compiler_params=_cparams(("parallel", "parallel")),
    )(qkv, mask_add)


# ---------------------------------------------------------------------------
# Model (small synthetic BERT config; pretrained config is L=12, H=768, S=512)
# ---------------------------------------------------------------------------

CFG = dict(vocab=64, max_pos=16, type_vocab=2,
           hidden=32, heads=4, layers=2, intermediate=64, num_classes=2)
FC_PAD = 128   # lane-pad the 2-class head to a full 128-lane output


def init_params(key, cfg):
    H, I = cfg["hidden"], cfg["intermediate"]
    keys = iter(jax.random.split(key, 64))
    n = lambda shape: (0.02 * jax.random.normal(next(keys), shape)).astype(PARAM_DTYPE)
    zeros = lambda shape: jnp.zeros(shape, PARAM_DTYPE)
    ones = lambda shape: jnp.ones(shape, PARAM_DTYPE)

    fc_w = jnp.zeros((H, FC_PAD), PARAM_DTYPE).at[:, :cfg["num_classes"]].set(
        n((H, cfg["num_classes"])))

    params = {
        "word_emb": n((cfg["vocab"], H)),
        "pos_emb": n((cfg["max_pos"], H)),
        "type_emb": n((cfg["type_vocab"], H)),
        "emb_ln_g": ones((H,)), "emb_ln_b": zeros((H,)),
        "fc_w": fc_w, "fc_b": jnp.zeros((FC_PAD,), PARAM_DTYPE),
        "layers": [],
    }
    for _ in range(cfg["layers"]):
        params["layers"].append({
            # fused QKV projection: (H, 3H) weight, (3H,) bias
            "qkv_w": jnp.concatenate([n((H, H)), n((H, H)), n((H, H))], axis=1),
            "qkv_b": zeros((3 * H,)),
            "o_w": n((H, H)), "o_b": zeros((H,)),
            "ln1_g": ones((H,)), "ln1_b": zeros((H,)),
            "i_w": n((H, I)), "i_b": zeros((I,)),
            "f_w": n((I, H)), "f_b": zeros((H,)),
            "ln2_g": ones((H,)), "ln2_b": zeros((H,)),
        })
    return params


def bert_layer(x2, mask_add, lp, B, S, H, nH, dh):
    # x2: (B*S, H) bf16
    qkv = linear(x2, lp["qkv_w"], lp["qkv_b"])                       # one fused matmul
    ctx = attention(qkv.reshape(B, S, 3 * H), mask_add, nH, dh)      # (B, S, H)
    ctx = ctx.reshape(B * S, H)

    # attn-out projection fused with residual add + LayerNorm
    x2 = linear_add_layernorm(ctx, lp["o_w"], lp["o_b"], x2,
                              lp["ln1_g"], lp["ln1_b"])

    # fused FFN (up-proj + GELU + down-proj + residual + LayerNorm)
    x2 = ffn_block(x2, lp["i_w"], lp["i_b"], lp["f_w"], lp["f_b"],
                   lp["ln2_g"], lp["ln2_b"])
    return x2


def bert_classification_forward(params, input_ids, attention_mask, cfg):
    B, S = input_ids.shape
    H, nH = cfg["hidden"], cfg["heads"]
    dh = H // nH

    # Embedding gathers stay in JAX glue; LayerNorm is a Pallas kernel.
    # token_type_ids are all zero, as in the reference.
    word = jnp.take(params["word_emb"], input_ids, axis=0)           # (B,S,H)
    pos = params["pos_emb"][:S][None, :, :]
    tok = params["type_emb"][0][None, None, :]
    emb = (word + pos + tok).reshape(B * S, H)
    x2 = layernorm(emb, params["emb_ln_g"], params["emb_ln_b"])

    # additive attention mask: 0 where attend, -1e9 where padded (f32)
    mask_add = ((1.0 - attention_mask.astype(jnp.float32)) * -1e9).reshape(B, 1, S)

    for lp in params["layers"]:
        x2 = bert_layer(x2, mask_add, lp, B, S, H, nH, dh)

    cls = x2.reshape(B, S, H)[:, 0, :]                               # hidden[0][:, 0, :]
    logits = linear(cls, params["fc_w"], params["fc_b"],
                    out_dtype=jnp.float32)[:, :cfg["num_classes"]]   # self.fc (lane-padded)
    return logits


# ---------------------------------------------------------------------------

if __name__ == "__main__":
    key = jax.random.PRNGKey(0)
    pkey, ikey = jax.random.split(key)

    params = init_params(pkey, CFG)

    B, S = 2, 8
    input_ids = jax.random.randint(ikey, (B, S), 0, CFG["vocab"], dtype=jnp.int32)
    attention_mask = jnp.ones((B, S), jnp.int32).at[1, 6:].set(0)    # simulate padding

    fwd = jax.jit(partial(bert_classification_forward, cfg=CFG))
    logits = fwd(params, input_ids, attention_mask)
    jax.block_until_ready(logits)

    assert logits.shape == (B, CFG["num_classes"])
    assert jnp.all(jnp.isfinite(logits))
    print("KERNEL_OK")
</pallas_src>

<mosaic_0001>
module attributes {stable_mosaic.version = 11 : i64} {
  func.func @_layernorm_kernel(%arg0: i32, %arg1: memref<16x32xbf16, #tpu.memory_space<vmem>>, %arg2: memref<1x32xbf16, #tpu.memory_space<vmem>>, %arg3: memref<1x32xbf16, #tpu.memory_space<vmem>>, %arg4: memref<16x32xbf16, #tpu.memory_space<vmem>>) attributes {dimension_semantics = [#tpu.dimension_semantics<parallel>], iteration_bounds = array<i64: 1>, scalar_prefetch = 0 : i64, scratch_operands = 0 : i64, tpu.core_type = #tpu.core_type<tc>, window_params = [{transform_indices = @transform_0, window_bounds = array<i64: 16, 32>}, {pipeline_mode = #tpu.pipeline_mode<synchronous>, transform_indices = @transform_1, window_bounds = array<i64: 1, 32>}, {pipeline_mode = #tpu.pipeline_mode<synchronous>, transform_indices = @transform_2, window_bounds = array<i64: 1, 32>}, {transform_indices = @transform_3, window_bounds = array<i64: 16, 32>}]} {
    %c0 = arith.constant 0 : index
    %c0_0 = arith.constant 0 : index
    %0 = vector.load %arg1[%c0, %c0_0] : memref<16x32xbf16, #tpu.memory_space<vmem>>, vector<16x32xbf16>
    %1 = arith.extf %0 : vector<16x32xbf16> to vector<16x32xf32>
    %cst = arith.constant dense<0.000000e+00> : vector<16xf32>
    %2 = vector.multi_reduction <add>, %1, %cst [1] : vector<16x32xf32> to vector<16xf32>
    %3 = vector.shape_cast %2 : vector<16xf32> to vector<16x1xf32>
    %cst_1 = arith.constant 3.200000e+01 : f32
    %4 = vector.broadcast %cst_1 : f32 to vector<16x1xf32>
    %5 = arith.divf %3, %4 : vector<16x1xf32>
    %6 = vector.broadcast %5 : vector<16x1xf32> to vector<16x32xf32>
    %7 = arith.subf %1, %6 : vector<16x32xf32>
    %8 = arith.mulf %7, %7 : vector<16x32xf32>
    %cst_2 = arith.constant dense<0.000000e+00> : vector<16xf32>
    %9 = vector.multi_reduction <add>, %8, %cst_2 [1] : vector<16x32xf32> to vector<16xf32>
    %10 = vector.shape_cast %9 : vector<16xf32> to vector<16x1xf32>
    %cst_3 = arith.constant 3.200000e+01 : f32
    %11 = vector.broadcast %cst_3 : f32 to vector<16x1xf32>
    %12 = arith.divf %10, %11 : vector<16x1xf32>
    %13 = vector.broadcast %5 : vector<16x1xf32> to vector<16x32xf32>
    %14 = arith.subf %1, %13 : vector<16x32xf32>
    %cst_4 = arith.constant 9.99999996E-13 : f32
    %15 = vector.broadcast %cst_4 : f32 to vector<16x1xf32>
    %16 = arith.addf %12, %15 : vector<16x1xf32>
    %17 = math.rsqrt %16 : vector<16x1xf32>
    %18 = vector.broadcast %17 : vector<16x1xf32> to vector<16x32xf32>
    %19 = arith.mulf %14, %18 : vector<16x32xf32>
    %c0_5 = arith.constant 0 : index
    %c0_6 = arith.constant 0 : index
    %20 = vector.load %arg2[%c0_5, %c0_6] : memref<1x32xbf16, #tpu.memory_space<vmem>>, vector<1x32xbf16>
    %21 = arith.extf %20 : vector<1x32xbf16> to vector<1x32xf32>
    %22 = vector.broadcast %21 : vector<1x32xf32> to vector<16x32xf32>
    %23 = arith.mulf %19, %22 : vector<16x32xf32>
    %c0_7 = arith.constant 0 : index
    %c0_8 = arith.constant 0 : index
    %24 = vector.load %arg3[%c0_7, %c0_8] : memref<1x32xbf16, #tpu.memory_space<vmem>>, vector<1x32xbf16>
    %25 = arith.extf %24 : vector<1x32xbf16> to vector<1x32xf32>
    %26 = vector.broadcast %25 : vector<1x32xf32> to vector<16x32xf32>
    %27 = arith.addf %23, %26 : vector<16x32xf32>
    %28 = arith.truncf %27 : vector<16x32xf32> to vector<16x32xbf16>
    %c0_9 = arith.constant 0 : index
    %c0_10 = arith.constant 0 : index
    %29 = vector.load %arg4[%c0_9, %c0_10] : memref<16x32xbf16, #tpu.memory_space<vmem>>, vector<16x32xbf16>
    tpu.vector_store %arg4[%c0_9, %c0_10], %28 {strides = array<i32>} : memref<16x32xbf16, #tpu.memory_space<vmem>>, vector<16x32xbf16>,
    return
  }
  func.func @transform_0(%arg0: i32) -> (i32, i32) {
    %c0_i32 = arith.constant 0 : i32
    %c0_i32_0 = arith.constant 0 : i32
    return %arg0, %c0_i32 : i32, i32
  }
  func.func @transform_1(%arg0: i32) -> (i32, i32) {
    %c0_i32 = arith.constant 0 : i32
    %c0_i32_0 = arith.constant 0 : i32
    %c0_i32_1 = arith.constant 0 : i32
    return %c0_i32, %c0_i32_0 : i32, i32
  }
  func.func @transform_2(%arg0: i32) -> (i32, i32) {
    %c0_i32 = arith.constant 0 : i32
    %c0_i32_0 = arith.constant 0 : i32
    %c0_i32_1 = arith.constant 0 : i32
    return %c0_i32, %c0_i32_0 : i32, i32
  }
  func.func @transform_3(%arg0: i32) -> (i32, i32) {
    %c0_i32 = arith.constant 0 : i32
    %c0_i32_0 = arith.constant 0 : i32
    return %arg0, %c0_i32 : i32, i32
  }
}

module attributes {stable_mosaic.version = 11 : i64} {
  func.func @_attention_kernel(%arg0: i32, %arg1: i32, %arg2: memref<1x8x96xbf16, #tpu.memory_space<vmem>>, %arg3: memref<1x1x8xf32, #tpu.memory_space<vmem>>, %arg4: memref<1x8x32xbf16, #tpu.memory_space<vmem>>) attributes {dimension_semantics = [#tpu.dimension_semantics<parallel>, #tpu.dimension_semantics<parallel>], iteration_bounds = array<i64: 2, 1>, scalar_prefetch = 0 : i64, scratch_operands = 0 : i64, tpu.core_type = #tpu.core_type<tc>, window_params = [{transform_indices = @transform_0, window_bounds = array<i64: 1, 8, 96>}, {transform_indices = @transform_1, window_bounds = array<i64: 1, 1, 8>}, {transform_indices = @transform_2, window_bounds = array<i64: 1, 8, 32>}]} {
    %c8_i32 = arith.constant 8 : i32
    %0 = arith.muli %arg1, %c8_i32 : i32
    %1 = tpu.assume_multiple %0, 8 : i32
    %c0 = arith.constant 0 : index
    %2 = arith.index_cast %1 : i32 to index
    %c0_0 = arith.constant 0 : index
    %3 = vector.load %arg2[%c0, %2, %c0_0] : memref<1x8x96xbf16, #tpu.memory_space<vmem>>, vector<1x8x96xbf16>
    %4 = vector.shape_cast %3 : vector<1x8x96xbf16> to vector<8x96xbf16>
    %c0_1 = arith.constant 0 : index
    %c0_2 = arith.constant 0 : index
    %c0_3 = arith.constant 0 : index
    %5 = vector.load %arg3[%c0_1, %c0_2, %c0_3] : memref<1x1x8xf32, #tpu.memory_space<vmem>>, vector<1x1x8xf32>
    %6 = vector.shape_cast %5 : vector<1x1x8xf32> to vector<1x8xf32>
    %7 = vector.extract_strided_slice %4 {offsets = [0, 0], sizes = [8, 8], strides = [1, 1]} : vector<8x96xbf16> to vector<8x8xbf16>
    %cst = arith.constant 3.535160e-01 : bf16
    %8 = vector.broadcast %cst : bf16 to vector<8x8xbf16>
    %9 = arith.mulf %7, %8 : vector<8x8xbf16>
    %c0_4 = arith.constant 0 : index
    %c0_5 = arith.constant 0 : index
    %c32 = arith.constant 32 : index
    %10 = vector.load %arg2[%c0_4, %c0_5, %c32] : memref<1x8x96xbf16, #tpu.memory_space<vmem>>, vector<1x8x8xbf16>
    %11 = vector.shape_cast %10 : vector<1x8x8xbf16> to vector<8x8xbf16>
    %c0_6 = arith.constant 0 : index
    %c0_7 = arith.constant 0 : index
    %c64 = arith.constant 64 : index
    %12 = vector.load %arg2[%c0_6, %c0_7, %c64] : memref<1x8x96xbf16, #tpu.memory_space<vmem>>, vector<1x8x8xbf16>
    %13 = vector.shape_cast %12 : vector<1x8x8xbf16> to vector<8x8xbf16>
    %cst_8 = arith.constant dense<0.000000e+00> : vector<8x8xf32>
    %14 = tpu.matmul %9, %11, %cst_8 {dimension_numbers = #tpu.dot_dimension_numbers<[1], [1], [0], [0], [0, 0, 1, 0], [], []>} : vector<8x8xbf16>, vector<8x8xbf16>, vector<8x8xf32> -> vector<8x8xf32>
    %15 = vector.broadcast %6 : vector<1x8xf32> to vector<8x8xf32>
    %16 = arith.addf %14, %15 : vector<8x8xf32>
    %cst_9 = arith.constant dense<0xFF800000> : vector<8xf32>
    %17 = vector.multi_reduction <maximumf>, %16, %cst_9 [1] : vector<8x8xf32> to vector<8xf32>
    %18 = vector.shape_cast %17 : vector<8xf32> to vector<8x1xf32>
    %19 = vector.broadcast %18 : vector<8x1xf32> to vector<8x8xf32>
    %20 = arith.subf %16, %19 : vector<8x8xf32>
    %21 = math.exp %20 : vector<8x8xf32>
    %cst_10 = arith.constant dense<0.000000e+00> : vector<8xf32>
    %22 = vector.multi_reduction <add>, %21, %cst_10 [1] : vector<8x8xf32> to vector<8xf32>
    %23 = vector.shape_cast %22 : vector<8xf32> to vector<8x1xf32>
    %24 = tpu.reciprocal %23 {approx = true} : vector<8x1xf32> -> vector<8x1xf32>
    %25 = vector.broadcast %24 : vector<8x1xf32> to vector<8x8xf32>
    %26 = arith.mulf %21, %25 : vector<8x8xf32>
    %27 = arith.truncf %26 : vector<8x8xf32> to vector<8x8xbf16>
    %cst_11 = arith.constant dense<0.000000e+00> : vector<8x8xf32>
    %28 = tpu.matmul %27, %13, %cst_11 {dimension_numbers = #tpu.dot_dimension_numbers<[1], [0], [0], [1], [0, 0, 1, 1], [], []>} : vector<8x8xbf16>, vector<8x8xbf16>, vector<8x8xf32> -> vector<8x8xf32>
    %29 = vector.extract_strided_slice %4 {offsets = [0, 8], sizes = [8, 8], strides = [1, 1]} : vector<8x96xbf16> to vector<8x8xbf16>
    %cst_12 = arith.constant 3.535160e-01 : bf16
    %30 = vector.broadcast %cst_12 : bf16 to vector<8x8xbf16>
    %31 = arith.mulf %29, %30 : vector<8x8xbf16>
    %c0_13 = arith.constant 0 : index
    %c0_14 = arith.constant 0 : index
    %c40 = arith.constant 40 : index
    %32 = vector.load %arg2[%c0_13, %c0_14, %c40] : memref<1x8x96xbf16, #tpu.memory_space<vmem>>, vector<1x8x8xbf16>
    %33 = vector.shape_cast %32 : vector<1x8x8xbf16> to vector<8x8xbf16>
    %c0_15 = arith.constant 0 : index
    %c0_16 = arith.constant 0 : index
    %c72 = arith.constant 72 : index
    %34 = vector.load %arg2[%c0_15, %c0_16, %c72] : memref<1x8x96xbf16, #tpu.memory_space<vmem>>, vector<1x8x8xbf16>
    %35 = vector.shape_cast %34 : vector<1x8x8xbf16> to vector<8x8xbf16>
    %cst_17 = arith.constant dense<0.000000e+00> : vector<8x8xf32>
    %36 = tpu.matmul %31, %33, %cst_17 {dimension_numbers = #tpu.dot_dimension_numbers<[1], [1], [0], [0], [0, 0, 1, 0], [], []>} : vector<8x8xbf16>, vector<8x8xbf16>, vector<8x8xf32> -> vector<8x8xf32>
    %37 = vector.broadcast %6 : vector<1x8xf32> to vector<8x8xf32>
    %38 = arith.addf %36, %37 : vector<8x8xf32>
    %cst_18 = arith.constant dense<0xFF800000> : vector<8xf32>
    %39 = vector.multi_reduction <maximumf>, %38, %cst_18 [1] : vector<8x8xf32> to vector<8xf32>
    %40 = vector.shape_cast %39 : vector<8xf32> to vector<8x1xf32>
    %41 = vector.broadcast %40 : vector<8x1xf32> to vector<8x8xf32>
    %42 = arith.subf %38, %41 : vector<8x8xf32>
    %43 = math.exp %42 : vector<8x8xf32>
    %cst_19 = arith.constant dense<0.000000e+00> : vector<8xf32>
    %44 = vector.multi_reduction <add>, %43, %cst_19 [1] : vector<8x8xf32> to vector<8xf32>
    %45 = vector.shape_cast %44 : vector<8xf32> to vector<8x1xf32>
    %46 = tpu.reciprocal %45 {approx = true} : vector<8x1xf32> -> vector<8x1xf32>
    %47 = vector.broadcast %46 : vector<8x1xf32> to vector<8x8xf32>
    %48 = arith.mulf %43, %47 : vector<8x8xf32>
    %49 = arith.truncf %48 : vector<8x8xf32> to vector<8x8xbf16>
    %cst_20 = arith.constant dense<0.000000e+00> : vector<8x8xf32>
    %50 = tpu.matmul %49, %35, %cst_20 {dimension_numbers = #tpu.dot_dimension_numbers<[1], [0], [0], [1], [0, 0, 1, 1], [], []>} : vector<8x8xbf16>, vector<8x8xbf16>, vector<8x8xf32> -> vector<8x8xf32>
    %51 = vector.extract_strided_slice %4 {offsets = [0, 16], sizes = [8, 8], strides = [1, 1]} : vector<8x96xbf16> to vector<8x8xbf16>
    %cst_21 = arith.constant 3.535160e-01 : bf16
    %52 = vector.broadcast %cst_21 : bf16 to vector<8x8xbf16>
    %53 = arith.mulf %51, %52 : vector<8x8xbf16>
    %c0_22 = arith.constant 0 : index
    %c0_23 = arith.constant 0 : index
    %c48 = arith.constant 48 : index
    %54 = vector.load %arg2[%c0_22, %c0_23, %c48] : memref<1x8x96xbf16, #tpu.memory_space<vmem>>, vector<1x8x8xbf16>
    %55 = vector.shape_cast %54 : vector<1x8x8xbf16> to vector<8x8xbf16>
    %c0_24 = arith.constant 0 : index
    %c0_25 = arith.constant 0 : index
    %c80 = arith.constant 80 : index
    %56 = vector.load %arg2[%c0_24, %c0_25, %c80] : memref<1x8x96xbf16, #tpu.memory_space<vmem>>, vector<1x8x8xbf16>
    %57 = vector.shape_cast %56 : vector<1x8x8xbf16> to vector<8x8xbf16>
    %cst_26 = arith.constant dense<0.000000e+00> : vector<8x8xf32>
    %58 = tpu.matmul %53, %55, %cst_26 {dimension_numbers = #tpu.dot_dimension_numbers<[1], [1], [0], [0], [0, 0, 1, 0], [], []>} : vector<8x8xbf16>, vector<8x8xbf16>, vector<8x8xf32> -> vector<8x8xf32>
    %59 = vector.broadcast %6 : vector<1x8xf32> to vector<8x8xf32>
    %60 = arith.addf %58, %59 : vector<8x8xf32>
    %cst_27 = arith.constant dense<0xFF800000> : vector<8xf32>
    %61 = vector.multi_reduction <maximumf>, %60, %cst_27 [1] : vector<8x8xf32> to vector<8xf32>
    %62 = vector.shape_cast %61 : vector<8xf32> to vector<8x1xf32>
    %63 = vector.broadcast %62 : vector<8x1xf32> to vector<8x8xf32>
    %64 = arith.subf %60, %63 : vector<8x8xf32>
    %65 = math.exp %64 : vector<8x8xf32>
    %cst_28 = arith.constant dense<0.000000e+00> : vector<8xf32>
    %66 = vector.multi_reduction <add>, %65, %cst_28 [1] : vector<8x8xf32> to vector<8xf32>
    %67 = vector.shape_cast %66 : vector<8xf32> to vector<8x1xf32>
    %68 = tpu.reciprocal %67 {approx = true} : vector<8x1xf32> -> vector<8x1xf32>
    %69 = vector.broadcast %68 : vector<8x1xf32> to vector<8x8xf32>
    %70 = arith.mulf %65, %69 : vector<8x8xf32>
    %71 = arith.truncf %70 : vector<8x8xf32> to vector<8x8xbf16>
    %cst_29 = arith.constant dense<0.000000e+00> : vector<8x8xf32>
    %72 = tpu.matmul %71, %57, %cst_29 {dimension_numbers = #tpu.dot_dimension_numbers<[1], [0], [0], [1], [0, 0, 1, 1], [], []>} : vector<8x8xbf16>, vector<8x8xbf16>, vector<8x8xf32> -> vector<8x8xf32>
    %73 = vector.extract_strided_slice %4 {offsets = [0, 24], sizes = [8, 8], strides = [1, 1]} : vector<8x96xbf16> to vector<8x8xbf16>
    %cst_30 = arith.constant 3.535160e-01 : bf16
    %74 = vector.broadcast %cst_30 : bf16 to vector<8x8xbf16>
    %75 = arith.mulf %73, %74 : vector<8x8xbf16>
    %c0_31 = arith.constant 0 : index
    %c0_32 = arith.constant 0 : index
    %c56 = arith.constant 56 : index
    %76 = vector.load %arg2[%c0_31, %c0_32, %c56] : memref<1x8x96xbf16, #tpu.memory_space<vmem>>, vector<1x8x8xbf16>
    %77 = vector.shape_cast %76 : vector<1x8x8xbf16> to vector<8x8xbf16>
    %c0_33 = arith.constant 0 : index
    %c0_34 = arith.constant 0 : index
    %c88 = arith.constant 88 : index
    %78 = vector.load %arg2[%c0_33, %c0_34, %c88] : memref<1x8x96xbf16, #tpu.memory_space<vmem>>, vector<1x8x8xbf16>
    %79 = vector.shape_cast %78 : vector<1x8x8xbf16> to vector<8x8xbf16>
    %cst_35 = arith.constant dense<0.000000e+00> : vector<8x8xf32>
    %80 = tpu.matmul %75, %77, %cst_35 {dimension_numbers = #tpu.dot_dimension_numbers<[1], [1], [0], [0], [0, 0, 1, 0], [], []>} : vector<8x8xbf16>, vector<8x8xbf16>, vector<8x8xf32> -> vector<8x8xf32>
    %81 = vector.broadcast %6 : vector<1x8xf32> to vector<8x8xf32>
    %82 = arith.addf %80, %81 : vector<8x8xf32>
    %cst_36 = arith.constant dense<0xFF800000> : vector<8xf32>
    %83 = vector.multi_reduction <maximumf>, %82, %cst_36 [1] : vector<8x8xf32> to vector<8xf32>
    %84 = vector.shape_cast %83 : vector<8xf32> to vector<8x1xf32>
    %85 = vector.broadcast %84 : vector<8x1xf32> to vector<8x8xf32>
    %86 = arith.subf %82, %85 : vector<8x8xf32>
    %87 = math.exp %86 : vector<8x8xf32>
    %cst_37 = arith.constant dense<0.000000e+00> : vector<8xf32>
    %88 = vector.multi_reduction <add>, %87, %cst_37 [1] : vector<8x8xf32> to vector<8xf32>
    %89 = vector.shape_cast %88 : vector<8xf32> to vector<8x1xf32>
    %90 = tpu.reciprocal %89 {approx = true} : vector<8x1xf32> -> vector<8x1xf32>
    %91 = vector.broadcast %90 : vector<8x1xf32> to vector<8x8xf32>
    %92 = arith.mulf %87, %91 : vector<8x8xf32>
    %93 = arith.truncf %92 : vector<8x8xf32> to vector<8x8xbf16>
    %cst_38 = arith.constant dense<0.000000e+00> : vector<8x8xf32>
    %94 = tpu.matmul %93, %79, %cst_38 {dimension_numbers = #tpu.dot_dimension_numbers<[1], [0], [0], [1], [0, 0, 1, 1], [], []>} : vector<8x8xbf16>, vector<8x8xbf16>, vector<8x8xf32> -> vector<8x8xf32>
    %95 = tpu.concatenate %28, %50, %72, %94 in 1 : vector<8x8xf32>, vector<8x8xf32>, vector<8x8xf32>, vector<8x8xf32> -> vector<8x32xf32>
    %96 = arith.truncf %95 : vector<8x32xf32> to vector<8x32xbf16>
    %c0_39 = arith.constant 0 : index
    %c0_40 = arith.constant 0 : index
    %c0_41 = arith.constant 0 : index
    %97 = vector.load %arg4[%c0_39, %c0_40, %c0_41] : memref<1x8x32xbf16, #tpu.memory_space<vmem>>, vector<1x8x32xbf16>
    %98 = vector.shape_cast %97 : vector<1x8x32xbf16> to vector<8x32xbf16>
    %99 = vector.shape_cast %96 : vector<8x32xbf16> to vector<1x8x32xbf16>
    tpu.vector_store %arg4[%c0_39, %c0_40, %c0_41], %99 {strides = array<i32>} : memref<1x8x32xbf16, #tpu.memory_space<vmem>>, vector<1x8x32xbf16>,
    return
  }
  func.func @transform_0(%arg0: i32, %arg1: i32) -> (i32, i32, i32) {
    %c0_i32 = arith.constant 0 : i32
    %c0_i32_0 = arith.constant 0 : i32
    %c0_i32_1 = arith.constant 0 : i32
    return %arg0, %c0_i32, %c0_i32_0 : i32, i32, i32
  }
  func.func @transform_1(%arg0: i32, %arg1: i32) -> (i32, i32, i32) {
    %c0_i32 = arith.constant 0 : i32
    %c0_i32_0 = arith.constant 0 : i32
    %c0_i32_1 = arith.constant 0 : i32
    return %arg0, %c0_i32, %c0_i32_0 : i32, i32, i32
  }
  func.func @transform_2(%arg0: i32, %arg1: i32) -> (i32, i32, i32) {
    %c0_i32 = arith.constant 0 : i32
    %c0_i32_0 = arith.constant 0 : i32
    return %arg0, %arg1, %c0_i32 : i32, i32, i32
  }
}

module attributes {stable_mosaic.version = 11 : i64} {
  func.func @_linear_wres_kernel(%arg0: i32, %arg1: memref<16x32xbf16, #tpu.memory_space<vmem>>, %arg2: memref<32x96xbf16, #tpu.memory_space<vmem>>, %arg3: memref<1x96xbf16, #tpu.memory_space<vmem>>, %arg4: memref<16x96xbf16, #tpu.memory_space<vmem>>) attributes {dimension_semantics = [#tpu.dimension_semantics<parallel>], iteration_bounds = array<i64: 1>, scalar_prefetch = 0 : i64, scratch_operands = 0 : i64, tpu.core_type = #tpu.core_type<tc>, window_params = [{transform_indices = @transform_0, window_bounds = array<i64: 16, 32>}, {pipeline_mode = #tpu.pipeline_mode<synchronous>, transform_indices = @transform_1, window_bounds = array<i64: 32, 96>}, {pipeline_mode = #tpu.pipeline_mode<synchronous>, transform_indices = @transform_2, window_bounds = array<i64: 1, 96>}, {transform_indices = @transform_3, window_bounds = array<i64: 16, 96>}]} {
    %c0 = arith.constant 0 : index
    %c0_0 = arith.constant 0 : index
    %0 = vector.load %arg1[%c0, %c0_0] : memref<16x32xbf16, #tpu.memory_space<vmem>>, vector<16x32xbf16>
    %c0_1 = arith.constant 0 : index
    %c0_2 = arith.constant 0 : index
    %1 = vector.load %arg2[%c0_1, %c0_2] : memref<32x96xbf16, #tpu.memory_space<vmem>>, vector<32x96xbf16>
    %cst = arith.constant dense<0.000000e+00> : vector<16x96xf32>
    %2 = tpu.matmul %0, %1, %cst {dimension_numbers = #tpu.dot_dimension_numbers<[1], [0], [0], [1], [0, 0, 1, 1], [], []>} : vector<16x32xbf16>, vector<32x96xbf16>, vector<16x96xf32> -> vector<16x96xf32>
    %c0_3 = arith.constant 0 : index
    %c0_4 = arith.constant 0 : index
    %3 = vector.load %arg3[%c0_3, %c0_4] : memref<1x96xbf16, #tpu.memory_space<vmem>>, vector<1x96xbf16>
    %4 = arith.extf %3 : vector<1x96xbf16> to vector<1x96xf32>
    %5 = vector.broadcast %4 : vector<1x96xf32> to vector<16x96xf32>
    %6 = arith.addf %2, %5 : vector<16x96xf32>
    %7 = arith.truncf %6 : vector<16x96xf32> to vector<16x96xbf16>
    %c0_5 = arith.constant 0 : index
    %c0_6 = arith.constant 0 : index
    %8 = vector.load %arg4[%c0_5, %c0_6] : memref<16x96xbf16, #tpu.memory_space<vmem>>, vector<16x96xbf16>
    tpu.vector_store %arg4[%c0_5, %c0_6], %7 {strides = array<i32>} : memref<16x96xbf16, #tpu.memory_space<vmem>>, vector<16x96xbf16>,
    return
  }
  func.func @transform_0(%arg0: i32) -> (i32, i32) {
    %c0_i32 = arith.constant 0 : i32
    %c0_i32_0 = arith.constant 0 : i32
    return %arg0, %c0_i32 : i32, i32
  }
  func.func @transform_1(%arg0: i32) -> (i32, i32) {
    %c0_i32 = arith.constant 0 : i32
    %c0_i32_0 = arith.constant 0 : i32
    %c0_i32_1 = arith.constant 0 : i32
    return %c0_i32, %c0_i32_0 : i32, i32
  }
  func.func @transform_2(%arg0: i32) -> (i32, i32) {
    %c0_i32 = arith.constant 0 : i32
    %c0_i32_0 = arith.constant 0 : i32
    %c0_i32_1 = arith.constant 0 : i32
    return %c0_i32, %c0_i32_0 : i32, i32
  }
  func.func @transform_3(%arg0: i32) -> (i32, i32) {
    %c0_i32 = arith.constant 0 : i32
    %c0_i32_0 = arith.constant 0 : i32
    return %arg0, %c0_i32 : i32, i32
  }
}

module attributes {stable_mosaic.version = 11 : i64} {
  func.func @_linear_add_ln_wres_kernel(%arg0: i32, %arg1: memref<16x32xbf16, #tpu.memory_space<vmem>>, %arg2: memref<32x32xbf16, #tpu.memory_space<vmem>>, %arg3: memref<1x32xbf16, #tpu.memory_space<vmem>>, %arg4: memref<16x32xbf16, #tpu.memory_space<vmem>>, %arg5: memref<1x32xbf16, #tpu.memory_space<vmem>>, %arg6: memref<1x32xbf16, #tpu.memory_space<vmem>>, %arg7: memref<16x32xbf16, #tpu.memory_space<vmem>>) attributes {dimension_semantics = [#tpu.dimension_semantics<parallel>], iteration_bounds = array<i64: 1>, scalar_prefetch = 0 : i64, scratch_operands = 0 : i64, tpu.core_type = #tpu.core_type<tc>, window_params = [{transform_indices = @transform_0, window_bounds = array<i64: 16, 32>}, {pipeline_mode = #tpu.pipeline_mode<synchronous>, transform_indices = @transform_1, window_bounds = array<i64: 32, 32>}, {pipeline_mode = #tpu.pipeline_mode<synchronous>, transform_indices = @transform_2, window_bounds = array<i64: 1, 32>}, {transform_indices = @transform_3, window_bounds = array<i64: 16, 32>}, {pipeline_mode = #tpu.pipeline_mode<synchronous>, transform_indices = @transform_4, window_bounds = array<i64: 1, 32>}, {pipeline_mode = #tpu.pipeline_mode<synchronous>, transform_indices = @transform_5, window_bounds = array<i64: 1, 32>}, {transform_indices = @transform_6, window_bounds = array<i64: 16, 32>}]} {
    %c0 = arith.constant 0 : index
    %c0_0 = arith.constant 0 : index
    %0 = vector.load %arg1[%c0, %c0_0] : memref<16x32xbf16, #tpu.memory_space<vmem>>, vector<16x32xbf16>
    %c0_1 = arith.constant 0 : index
    %c0_2 = arith.constant 0 : index
    %1 = vector.load %arg2[%c0_1, %c0_2] : memref<32x32xbf16, #tpu.memory_space<vmem>>, vector<32x32xbf16>
    %cst = arith.constant dense<0.000000e+00> : vector<16x32xf32>
    %2 = tpu.matmul %0, %1, %cst {dimension_numbers = #tpu.dot_dimension_numbers<[1], [0], [0], [1], [0, 0, 1, 1], [], []>} : vector<16x32xbf16>, vector<32x32xbf16>, vector<16x32xf32> -> vector<16x32xf32>
    %c0_3 = arith.constant 0 : index
    %c0_4 = arith.constant 0 : index
    %3 = vector.load %arg3[%c0_3, %c0_4] : memref<1x32xbf16, #tpu.memory_space<vmem>>, vector<1x32xbf16>
    %4 = arith.extf %3 : vector<1x32xbf16> to vector<1x32xf32>
    %5 = vector.broadcast %4 : vector<1x32xf32> to vector<16x32xf32>
    %6 = arith.addf %2, %5 : vector<16x32xf32>
    %c0_5 = arith.constant 0 : index
    %c0_6 = arith.constant 0 : index
    %7 = vector.load %arg4[%c0_5, %c0_6] : memref<16x32xbf16, #tpu.memory_space<vmem>>, vector<16x32xbf16>
    %8 = arith.extf %7 : vector<16x32xbf16> to vector<16x32xf32>
    %9 = arith.addf %6, %8 : vector<16x32xf32>
    %cst_7 = arith.constant dense<0.000000e+00> : vector<16xf32>
    %10 = vector.multi_reduction <add>, %9, %cst_7 [1] : vector<16x32xf32> to vector<16xf32>
    %11 = vector.shape_cast %10 : vector<16xf32> to vector<16x1xf32>
    %cst_8 = arith.constant 3.200000e+01 : f32
    %12 = vector.broadcast %cst_8 : f32 to vector<16x1xf32>
    %13 = arith.divf %11, %12 : vector<16x1xf32>
    %14 = vector.broadcast %13 : vector<16x1xf32> to vector<16x32xf32>
    %15 = arith.subf %9, %14 : vector<16x32xf32>
    %16 = arith.mulf %15, %15 : vector<16x32xf32>
    %cst_9 = arith.constant dense<0.000000e+00> : vector<16xf32>
    %17 = vector.multi_reduction <add>, %16, %cst_9 [1] : vector<16x32xf32> to vector<16xf32>
    %18 = vector.shape_cast %17 : vector<16xf32> to vector<16x1xf32>
    %cst_10 = arith.constant 3.200000e+01 : f32
    %19 = vector.broadcast %cst_10 : f32 to vector<16x1xf32>
    %20 = arith.divf %18, %19 : vector<16x1xf32>
    %21 = vector.broadcast %13 : vector<16x1xf32> to vector<16x32xf32>
    %22 = arith.subf %9, %21 : vector<16x32xf32>
    %cst_11 = arith.constant 9.99999996E-13 : f32
    %23 = vector.broadcast %cst_11 : f32 to vector<16x1xf32>
    %24 = arith.addf %20, %23 : vector<16x1xf32>
    %25 = math.rsqrt %24 : vector<16x1xf32>
    %26 = vector.broadcast %25 : vector<16x1xf32> to vector<16x32xf32>
    %27 = arith.mulf %22, %26 : vector<16x32xf32>
    %c0_12 = arith.constant 0 : index
    %c0_13 = arith.constant 0 : index
    %28 = vector.load %arg5[%c0_12, %c0_13] : memref<1x32xbf16, #tpu.memory_space<vmem>>, vector<1x32xbf16>
    %29 = arith.extf %28 : vector<1x32xbf16> to vector<1x32xf32>
    %30 = vector.broadcast %29 : vector<1x32xf32> to vector<16x32xf32>
    %31 = arith.mulf %27, %30 : vector<16x32xf32>
    %c0_14 = arith.constant 0 : index
    %c0_15 = arith.constant 0 : index
    %32 = vector.load %arg6[%c0_14, %c0_15] : memref<1x32xbf16, #tpu.memory_space<vmem>>, vector<1x32xbf16>
    %33 = arith.extf %32 : vector<1x32xbf16> to vector<1x32xf32>
    %34 = vector.broadcast %33 : vector<1x32xf32> to vector<16x32xf32>
    %35 = arith.addf %31, %34 : vector<16x32xf32>
    %36 = arith.truncf %35 : vector<16x32xf32> to vector<16x32xbf16>
    %c0_16 = arith.constant 0 : index
    %c0_17 = arith.constant 0 : index
    %37 = vector.load %arg7[%c0_16, %c0_17] : memref<16x32xbf16, #tpu.memory_space<vmem>>, vector<16x32xbf16>
    tpu.vector_store %arg7[%c0_16, %c0_17], %36 {strides = array<i32>} : memref<16x32xbf16, #tpu.memory_space<vmem>>, vector<16x32xbf16>,
    return
  }
  func.func @transform_0(%arg0: i32) -> (i32, i32) {
    %c0_i32 = arith.constant 0 : i32
    %c0_i32_0 = arith.constant 0 : i32
    return %arg0, %c0_i32 : i32, i32
  }
  func.func @transform_1(%arg0: i32) -> (i32, i32) {
    %c0_i32 = arith.constant 0 : i32
    %c0_i32_0 = arith.constant 0 : i32
    %c0_i32_1 = arith.constant 0 : i32
    return %c0_i32, %c0_i32_0 : i32, i32
  }
  func.func @transform_2(%arg0: i32) -> (i32, i32) {
    %c0_i32 = arith.constant 0 : i32
    %c0_i32_0 = arith.constant 0 : i32
    %c0_i32_1 = arith.constant 0 : i32
    return %c0_i32, %c0_i32_0 : i32, i32
  }
  func.func @transform_3(%arg0: i32) -> (i32, i32) {
    %c0_i32 = arith.constant 0 : i32
    %c0_i32_0 = arith.constant 0 : i32
    return %arg0, %c0_i32 : i32, i32
  }
  func.func @transform_4(%arg0: i32) -> (i32, i32) {
    %c0_i32 = arith.constant 0 : i32
    %c0_i32_0 = arith.constant 0 : i32
    %c0_i32_1 = arith.constant 0 : i32
    return %c0_i32, %c0_i32_0 : i32, i32
  }
  func.func @transform_5(%arg0: i32) -> (i32, i32) {
    %c0_i32 = arith.constant 0 : i32
    %c0_i32_0 = arith.constant 0 : i32
    %c0_i32_1 = arith.constant 0 : i32
    return %c0_i32, %c0_i32_0 : i32, i32
  }
  func.func @transform_6(%arg0: i32) -> (i32, i32) {
    %c0_i32 = arith.constant 0 : i32
    %c0_i32_0 = arith.constant 0 : i32
    return %arg0, %c0_i32 : i32, i32
  }
}

module attributes {stable_mosaic.version = 11 : i64} {
  func.func @_ffn_kernel(%arg0: i32, %arg1: memref<16x32xbf16, #tpu.memory_space<vmem>>, %arg2: memref<32x64xbf16, #tpu.memory_space<vmem>>, %arg3: memref<1x64xbf16, #tpu.memory_space<vmem>>, %arg4: memref<64x32xbf16, #tpu.memory_space<vmem>>, %arg5: memref<1x32xbf16, #tpu.memory_space<vmem>>, %arg6: memref<1x32xbf16, #tpu.memory_space<vmem>>, %arg7: memref<1x32xbf16, #tpu.memory_space<vmem>>, %arg8: memref<16x32xbf16, #tpu.memory_space<vmem>>) attributes {dimension_semantics = [#tpu.dimension_semantics<parallel>], iteration_bounds = array<i64: 1>, scalar_prefetch = 0 : i64, scratch_operands = 0 : i64, tpu.core_type = #tpu.core_type<tc>, window_params = [{transform_indices = @transform_0, window_bounds = array<i64: 16, 32>}, {pipeline_mode = #tpu.pipeline_mode<synchronous>, transform_indices = @transform_1, window_bounds = array<i64: 32, 64>}, {pipeline_mode = #tpu.pipeline_mode<synchronous>, transform_indices = @transform_2, window_bounds = array<i64: 1, 64>}, {pipeline_mode = #tpu.pipeline_mode<synchronous>, transform_indices = @transform_3, window_bounds = array<i64: 64, 32>}, {pipeline_mode = #tpu.pipeline_mode<synchronous>, transform_indices = @transform_4, window_bounds = array<i64: 1, 32>}, {pipeline_mode = #tpu.pipeline_mode<synchronous>, transform_indices = @transform_5, window_bounds = array<i64: 1, 32>}, {pipeline_mode = #tpu.pipeline_mode<synchronous>, transform_indices = @transform_6, window_bounds = array<i64: 1, 32>}, {transform_indices = @transform_7, window_bounds = array<i64: 16, 32>}]} {
    %c0 = arith.constant 0 : index
    %c0_0 = arith.constant 0 : index
    %0 = vector.load %arg1[%c0, %c0_0] : memref<16x32xbf16, #tpu.memory_space<vmem>>, vector<16x32xbf16>
    %c0_1 = arith.constant 0 : index
    %c0_2 = arith.constant 0 : index
    %1 = vector.load %arg2[%c0_1, %c0_2] : memref<32x64xbf16, #tpu.memory_space<vmem>>, vector<32x64xbf16>
    %cst = arith.constant dense<0.000000e+00> : vector<16x64xf32>
    %2 = tpu.matmul %0, %1, %cst {dimension_numbers = #tpu.dot_dimension_numbers<[1], [0], [0], [1], [0, 0, 1, 1], [], []>} : vector<16x32xbf16>, vector<32x64xbf16>, vector<16x64xf32> -> vector<16x64xf32>
    %c0_3 = arith.constant 0 : index
    %c0_4 = arith.constant 0 : index
    %3 = vector.load %arg3[%c0_3, %c0_4] : memref<1x64xbf16, #tpu.memory_space<vmem>>, vector<1x64xbf16>
    %4 = arith.extf %3 : vector<1x64xbf16> to vector<1x64xf32>
    %5 = vector.broadcast %4 : vector<1x64xf32> to vector<16x64xf32>
    %6 = arith.addf %2, %5 : vector<16x64xf32>
    %cst_5 = arith.constant 5.000000e-01 : f32
    %7 = vector.broadcast %cst_5 : f32 to vector<16x64xf32>
    %8 = arith.mulf %7, %6 : vector<16x64xf32>
    %cst_6 = arith.constant 4.471500e-02 : f32
    %9 = vector.broadcast %cst_6 : f32 to vector<16x64xf32>
    %10 = arith.mulf %9, %6 : vector<16x64xf32>
    %11 = arith.mulf %10, %6 : vector<16x64xf32>
    %12 = arith.mulf %11, %6 : vector<16x64xf32>
    %13 = arith.addf %6, %12 : vector<16x64xf32>
    %cst_7 = arith.constant 0.797884583 : f32
    %14 = vector.broadcast %cst_7 : f32 to vector<16x64xf32>
    %15 = arith.mulf %14, %13 : vector<16x64xf32>
    %16 = math.tanh %15 : vector<16x64xf32>
    %cst_8 = arith.constant 1.000000e+00 : f32
    %17 = vector.broadcast %cst_8 : f32 to vector<16x64xf32>
    %18 = arith.addf %17, %16 : vector<16x64xf32>
    %19 = arith.mulf %8, %18 : vector<16x64xf32>
    %20 = arith.truncf %19 : vector<16x64xf32> to vector<16x64xbf16>
    %c0_9 = arith.constant 0 : index
    %c0_10 = arith.constant 0 : index
    %21 = vector.load %arg4[%c0_9, %c0_10] : memref<64x32xbf16, #tpu.memory_space<vmem>>, vector<64x32xbf16>
    %cst_11 = arith.constant dense<0.000000e+00> : vector<16x32xf32>
    %22 = tpu.matmul %20, %21, %cst_11 {dimension_numbers = #tpu.dot_dimension_numbers<[1], [0], [0], [1], [0, 0, 1, 1], [], []>} : vector<16x64xbf16>, vector<64x32xbf16>, vector<16x32xf32> -> vector<16x32xf32>
    %c0_12 = arith.constant 0 : index
    %c0_13 = arith.constant 0 : index
    %23 = vector.load %arg5[%c0_12, %c0_13] : memref<1x32xbf16, #tpu.memory_space<vmem>>, vector<1x32xbf16>
    %24 = arith.extf %23 : vector<1x32xbf16> to vector<1x32xf32>
    %25 = vector.broadcast %24 : vector<1x32xf32> to vector<16x32xf32>
    %26 = arith.addf %22, %25 : vector<16x32xf32>
    %27 = arith.extf %0 : vector<16x32xbf16> to vector<16x32xf32>
    %28 = arith.addf %26, %27 : vector<16x32xf32>
    %cst_14 = arith.constant dense<0.000000e+00> : vector<16xf32>
    %29 = vector.multi_reduction <add>, %28, %cst_14 [1] : vector<16x32xf32> to vector<16xf32>
    %30 = vector.shape_cast %29 : vector<16xf32> to vector<16x1xf32>
    %cst_15 = arith.constant 3.200000e+01 : f32
    %31 = vector.broadcast %cst_15 : f32 to vector<16x1xf32>
    %32 = arith.divf %30, %31 : vector<16x1xf32>
    %33 = vector.broadcast %32 : vector<16x1xf32> to vector<16x32xf32>
    %34 = arith.subf %28, %33 : vector<16x32xf32>
    %35 = arith.mulf %34, %34 : vector<16x32xf32>
    %cst_16 = arith.constant dense<0.000000e+00> : vector<16xf32>
    %36 = vector.multi_reduction <add>, %35, %cst_16 [1] : vector<16x32xf32> to vector<16xf32>
    %37 = vector.shape_cast %36 : vector<16xf32> to vector<16x1xf32>
    %cst_17 = arith.constant 3.200000e+01 : f32
    %38 = vector.broadcast %cst_17 : f32 to vector<16x1xf32>
    %39 = arith.divf %37, %38 : vector<16x1xf32>
    %40 = vector.broadcast %32 : vector<16x1xf32> to vector<16x32xf32>
    %41 = arith.subf %28, %40 : vector<16x32xf32>
    %cst_18 = arith.constant 9.99999996E-13 : f32
    %42 = vector.broadcast %cst_18 : f32 to vector<16x1xf32>
    %43 = arith.addf %39, %42 : vector<16x1xf32>
    %44 = math.rsqrt %43 : vector<16x1xf32>
    %45 = vector.broadcast %44 : vector<16x1xf32> to vector<16x32xf32>
    %46 = arith.mulf %41, %45 : vector<16x32xf32>
    %c0_19 = arith.constant 0 : index
    %c0_20 = arith.constant 0 : index
    %47 = vector.load %arg6[%c0_19, %c0_20] : memref<1x32xbf16, #tpu.memory_space<vmem>>, vector<1x32xbf16>
    %48 = arith.extf %47 : vector<1x32xbf16> to vector<1x32xf32>
    %49 = vector.broadcast %48 : vector<1x32xf32> to vector<16x32xf32>
    %50 = arith.mulf %46, %49 : vector<16x32xf32>
    %c0_21 = arith.constant 0 : index
    %c0_22 = arith.constant 0 : index
    %51 = vector.load %arg7[%c0_21, %c0_22] : memref<1x32xbf16, #tpu.memory_space<vmem>>, vector<1x32xbf16>
    %52 = arith.extf %51 : vector<1x32xbf16> to vector<1x32xf32>
    %53 = vector.broadcast %52 : vector<1x32xf32> to vector<16x32xf32>
    %54 = arith.addf %50, %53 : vector<16x32xf32>
    %55 = arith.truncf %54 : vector<16x32xf32> to vector<16x32xbf16>
    %c0_23 = arith.constant 0 : index
    %c0_24 = arith.constant 0 : index
    %56 = vector.load %arg8[%c0_23, %c0_24] : memref<16x32xbf16, #tpu.memory_space<vmem>>, vector<16x32xbf16>
    tpu.vector_store %arg8[%c0_23, %c0_24], %55 {strides = array<i32>} : memref<16x32xbf16, #tpu.memory_space<vmem>>, vector<16x32xbf16>,
    return
  }
  func.func @transform_0(%arg0: i32) -> (i32, i32) {
    %c0_i32 = arith.constant 0 : i32
    %c0_i32_0 = arith.constant 0 : i32
    return %arg0, %c0_i32 : i32, i32
  }
  func.func @transform_1(%arg0: i32) -> (i32, i32) {
    %c0_i32 = arith.constant 0 : i32
    %c0_i32_0 = arith.constant 0 : i32
    %c0_i32_1 = arith.constant 0 : i32
    return %c0_i32, %c0_i32_0 : i32, i32
  }
  func.func @transform_2(%arg0: i32) -> (i32, i32) {
    %c0_i32 = arith.constant 0 : i32
    %c0_i32_0 = arith.constant 0 : i32
    %c0_i32_1 = arith.constant 0 : i32
    return %c0_i32, %c0_i32_0 : i32, i32
  }
  func.func @transform_3(%arg0: i32) -> (i32, i32) {
    %c0_i32 = arith.constant 0 : i32
    %c0_i32_0 = arith.constant 0 : i32
    %c0_i32_1 = arith.constant 0 : i32
    return %c0_i32, %c0_i32_0 : i32, i32
  }
  func.func @transform_4(%arg0: i32) -> (i32, i32) {
    %c0_i32 = arith.constant 0 : i32
    %c0_i32_0 = arith.constant 0 : i32
    %c0_i32_1 = arith.constant 0 : i32
    return %c0_i32, %c0_i32_0 : i32, i32
  }
  func.func @transform_5(%arg0: i32) -> (i32, i32) {
    %c0_i32 = arith.constant 0 : i32
    %c0_i32_0 = arith.constant 0 : i32
    %c0_i32_1 = arith.constant 0 : i32
    return %c0_i32, %c0_i32_0 : i32, i32
  }
  func.func @transform_6(%arg0: i32) -> (i32, i32) {
    %c0_i32 = arith.constant 0 : i32
    %c0_i32_0 = arith.constant 0 : i32
    %c0_i32_1 = arith.constant 0 : i32
    return %c0_i32, %c0_i32_0 : i32, i32
  }
  func.func @transform_7(%arg0: i32) -> (i32, i32) {
    %c0_i32 = arith.constant 0 : i32
    %c0_i32_0 = arith.constant 0 : i32
    return %arg0, %c0_i32 : i32, i32
  }
}

module attributes {stable_mosaic.version = 11 : i64} {
  func.func @_linear_wres_kernel(%arg0: i32, %arg1: memref<2x32xbf16, #tpu.memory_space<vmem>>, %arg2: memref<32x128xbf16, #tpu.memory_space<vmem>>, %arg3: memref<1x128xbf16, #tpu.memory_space<vmem>>, %arg4: memref<2x128xf32, #tpu.memory_space<vmem>>) attributes {dimension_semantics = [#tpu.dimension_semantics<parallel>], iteration_bounds = array<i64: 1>, scalar_prefetch = 0 : i64, scratch_operands = 0 : i64, tpu.core_type = #tpu.core_type<tc>, window_params = [{transform_indices = @transform_0, window_bounds = array<i64: 2, 32>}, {pipeline_mode = #tpu.pipeline_mode<synchronous>, transform_indices = @transform_1, window_bounds = array<i64: 32, 128>}, {pipeline_mode = #tpu.pipeline_mode<synchronous>, transform_indices = @transform_2, window_bounds = array<i64: 1, 128>}, {transform_indices = @transform_3, window_bounds = array<i64: 2, 128>}]} {
    %c0 = arith.constant 0 : index
    %c0_0 = arith.constant 0 : index
    %0 = vector.load %arg1[%c0, %c0_0] : memref<2x32xbf16, #tpu.memory_space<vmem>>, vector<2x32xbf16>
    %c0_1 = arith.constant 0 : index
    %c0_2 = arith.constant 0 : index
    %1 = vector.load %arg2[%c0_1, %c0_2] : memref<32x128xbf16, #tpu.memory_space<vmem>>, vector<32x128xbf16>
    %cst = arith.constant dense<0.000000e+00> : vector<2x128xf32>
    %2 = tpu.matmul %0, %1, %cst {dimension_numbers = #tpu.dot_dimension_numbers<[1], [0], [0], [1], [0, 0, 1, 1], [], []>} : vector<2x32xbf16>, vector<32x128xbf16>, vector<2x128xf32> -> vector<2x128xf32>
    %c0_3 = arith.constant 0 : index
    %c0_4 = arith.constant 0 : index
    %3 = vector.load %arg3[%c0_3, %c0_4] : memref<1x128xbf16, #tpu.memory_space<vmem>>, vector<1x128xbf16>
    %4 = arith.extf %3 : vector<1x128xbf16> to vector<1x128xf32>
    %5 = vector.broadcast %4 : vector<1x128xf32> to vector<2x128xf32>
    %6 = arith.addf %2, %5 : vector<2x128xf32>
    %c0_5 = arith.constant 0 : index
    %c0_6 = arith.constant 0 : index
    %7 = vector.load %arg4[%c0_5, %c0_6] : memref<2x128xf32, #tpu.memory_space<vmem>>, vector<2x128xf32>
    tpu.vector_store %arg4[%c0_5, %c0_6], %6 {strides = array<i32>} : memref<2x128xf32, #tpu.memory_space<vmem>>, vector<2x128xf32>,
    return
  }
  func.func @transform_0(%arg0: i32) -> (i32, i32) {
    %c0_i32 = arith.constant 0 : i32
    %c0_i32_0 = arith.constant 0 : i32
    return %arg0, %c0_i32 : i32, i32
  }
  func.func @transform_1(%arg0: i32) -> (i32, i32) {
    %c0_i32 = arith.constant 0 : i32
    %c0_i32_0 = arith.constant 0 : i32
    %c0_i32_1 = arith.constant 0 : i32
    return %c0_i32, %c0_i32_0 : i32, i32
  }
  func.func @transform_2(%arg0: i32) -> (i32, i32) {
    %c0_i32 = arith.constant 0 : i32
    %c0_i32_0 = arith.constant 0 : i32
    %c0_i32_1 = arith.constant 0 : i32
    return %c0_i32, %c0_i32_0 : i32, i32
  }
  func.func @transform_3(%arg0: i32) -> (i32, i32) {
    %c0_i32 = arith.constant 0 : i32
    %c0_i32_0 = arith.constant 0 : i32
    return %arg0, %c0_i32 : i32, i32
  }
}

</mosaic_0001>

<bundles_post_ra>
// kernel: bert_classification_forward.10
= control target key start
LH: loop header
LB: loop body
LE: loop exit
PB: predicated region body
PF: predicated region fallthrough
CT: control target
= control target key end

     0   :  { %vm18_vm0 = vcmask 261120   ;;  %v48_v17 = vlaneseq  ;;  %vm70_vm1 = vcmask 257024   ;;  %s128_s0 = inlined_call_operand.vmem [shape: bf16[16,32], index: 0, kind: input, shape index: {}]   ;;  %s129_s1 = inlined_call_operand.vmem [shape: bf16[1,32], index: 1, kind: input, shape index: {}]   ;;  %s130_s2 = inlined_call_operand.vmem [shape: bf16[1,32], index: 2, kind: input, shape index: {}]   ;;  %s131_s3 = inlined_call_operand.vmem [shape: bf16[16,32], index: 3, kind: output, shape index: {}]  }
   0x1   :  { %v82_v0 = vld [vmem:[%s128_s0] sm:$0xff]  }
   0x2   :  { %v83_v1 = vunpack.c.l.bf16 %v82_v0  ;;  %v84_v2 = vunpack.c.h.bf16 %v82_v0  ;;  %v49_v21 = vshrl.u32 %v48_v17, 7  ;;  %v46_v22 = vld [vmem:[%s129_s1] sm:$0x1] }
   0x3   :  { %v54_v24 = vld [vmem:[%s130_s2] sm:$0x1]  ;;  %v47_v25 = vunpack.c.l.bf16 %v46_v22 }
   0x4   :  { %v19_v3 = vsel %vm18_vm0, %v83_v1, 0.0  ;;  %v22_v4 = vsel %vm18_vm0, %v84_v2, 0.0  ;;  %v50_v26 = vsub.s32 0, %v49_v21  ;;  %v55_v27 = vunpack.c.l.bf16 %v54_v24 }
   0x5   :  { %20 = vadd.xlane.f32.xlu0 %v19_v3 }
   0x6   :  { %v51_v28 = vrot.slane %v47_v25, %v50_v26  ;;  %v59_v30 = vrot.slane %v55_v27, %v50_v26 }
   0x9   :  { %23 = vadd.xlane.f32.xlu0 %v22_v4 }
  0x92   :  { %v21_v5 = vpop.xlane.xlu0 %20 }
  0x93   :  { %v26_v6 = vmul.f32 0.03125, %v21_v5 }
  0x95   :  { %v28_v7 = vsub.f32 %v83_v1, %v26_v6 }
  0x96   :  { %v24_v8 = vpop.xlane.xlu0 %23 }
  0x97   :  { %v27_v9 = vmul.f32 0.03125, %v24_v8  ;;  %v30_v10 = vmul.f32 %v28_v7, %v28_v7 }
  0x99   :  { %v29_v11 = vsub.f32 %v84_v2, %v27_v9  ;;  %v32_v12 = vsel %vm18_vm0, %v30_v10, 0.0 }
  0x9a   :  { %33 = vadd.xlane.f32.xlu1 %v32_v12 }
  0x9b   :  { %v31_v13 = vmul.f32 %v29_v11, %v29_v11 }
  0x9d   :  { %v35_v14 = vsel %vm18_vm0, %v31_v13, 0.0 }
  0x9e   :  { %36 = vadd.xlane.f32.xlu1 %v35_v14 }
 0x127   :  { %v34_v15 = vpop.xlane.xlu1 %33 }
 0x128   :  { %v38_v16 = vmul.f32 0.03125, %v34_v15 }
 0x12a   :  { %v40_v18 = vadd.f32 1e-12, %v38_v16 }
 0x12b   :  { %v37_v19 = vpop.xlane.xlu1 %36 }
 0x12c   :  { %85 = vrsqrt.f32 %v40_v18  ;;  %v39_v20 = vmul.f32 0.03125, %v37_v19 }
 0x12e   :  { %v41_v23 = vadd.f32 1e-12, %v39_v20 }
 0x130   :  { %87 = vrsqrt.f32 %v41_v23 }
 0x136   :  { %v86_v29 = vpop.eup %85 }
 0x137   :  { %v44_v31 = vmul.f32 %v86_v29, %v28_v7 }
 0x139   :  { %v52_v32 = vmul.f32 %v51_v28, %v44_v31 }
 0x13a   :  { %v88_v33 = vpop.eup %87 }
 0x13b   :  { %v60_v34 = vadd.f32 %v59_v30, %v52_v32  ;;  %v45_v35 = vmul.f32 %v88_v33, %v29_v11 }
 0x13d   :  { %v79_v36 = vpack.c.bf16 %v60_v34, %v60_v34  ;;  %v53_v37 = vmul.f32 %v51_v28, %v45_v35 }
 0x13f   :  { %71 = vst.msk [vmem:[%s131_s3] sm:$0xf] %vm70_vm1, %v79_v36  ;;  %v61_v38 = vadd.f32 %v59_v30, %v53_v37 }
 0x141   :  { %v80_v39 = vpack.c.bf16 %v61_v38, %v61_v38 }
 0x143   :  { %72 = vst.msk [vmem:[%s131_s3 + $0x4] sm:$0xf] %vm70_vm1, %v80_v39 }

// kernel: bert_classification_forward.13
= control target key start
LH: loop header
LB: loop body
LE: loop exit
PB: predicated region body
PF: predicated region fallthrough
CT: control target
= control target key end

     0   :  { %v194_v0 = vmov 0.0   ;;  %vm195_vm0 = vmmov 0   ;;  %vm53_vm1 = vcmask 261120   ;;  %v32_v4 = vlaneseq  ;;  %s263_s1 = inlined_call_operand.vmem [shape: bf16[32,32], index: 1, kind: input, shape index: {}]   ;;  %s264_s0 = inlined_call_operand.vmem [shape: bf16[16,32], index: 0, kind: input, shape index: {}]   ;;  %s265_s2 = inlined_call_operand.vmem [shape: bf16[1,32], index: 2, kind: input, shape index: {}]   ;;  %s266_s3 = inlined_call_operand.vmem [shape: bf16[16,32], index: 3, kind: input, shape index: {}]   ;;  %s267_s4 = inlined_call_operand.vmem [shape: bf16[1,32], index: 4, kind: input, shape index: {}]   ;;  %s268_s5 = inlined_call_operand.vmem [shape: bf16[1,32], index: 5, kind: input, shape index: {}]   ;;  %s269_s6 = inlined_call_operand.vmem [shape: bf16[16,32], index: 6, kind: output, shape index: {}]  }
   0x1   :  { %177 = vmatprep.subr.bf16.mxu0 %v194_v0  ;;  %v187_v1 = vld [vmem:[%s263_s1] sm:$0xff]   ;;  %181 = vmatprep.mubr.msk.bf16.mxu0 %vm195_vm0, %v194_v0  ;;  %v188_v2 = vld [vmem:[%s263_s1 + $0x8] sm:$0xff]   ;;  %vm155_vm2 = vcmask 257024  }
   0x2   :  { %178 = vmatpush3.bf16.msra.mxu0 %v187_v1  ;;  %v189_v3 = vld [vmem:[%s264_s0] sm:$0xff]   ;;  %v33_v5 = vshrl.u32 %v32_v4, 7 }
   0x3   :  { %179 = vmatprep.subr.bf16.mxu0 %v194_v0  ;;  %v30_v6 = vld [vmem:[%s265_s2] sm:$0x1] }
   0x4   :  { %v31_v7 = vunpack.c.l.bf16 %v30_v6  ;;  %v34_v8 = vsub.s32 0, %v33_v5  ;;  %v171_v9 = vld [vmem:[%s266_s3] sm:$0xff]  }
   0x5   :  { %v172_v11 = vunpack.c.l.bf16 %v171_v9  ;;  %v173_v15 = vunpack.c.h.bf16 %v171_v9  ;;  %v131_v38 = vld [vmem:[%s267_s4] sm:$0x1] }
   0x6   :  { %180 = vmatpush3.bf16.msra.mxu0 %v188_v2  ;;  %v35_v10 = vrot.slane %v31_v7, %v34_v8  ;;  %v139_v40 = vld [vmem:[%s268_s5] sm:$0x1]  ;;  %v132_v41 = vunpack.c.l.bf16 %v131_v38 }
   0x7   :  { %v140_v42 = vunpack.c.l.bf16 %v139_v40 }
   0x8   :  { %v136_v43 = vrot.slane %v132_v41, %v34_v8 }
   0x9   :  { %182 = vmatmul.mubr.msk.bf16.vlgmr.msra.gmra.mrb[0].mxu0 %vm53_vm1, %v189_v3  ;;  %v144_v45 = vrot.slane %v140_v42, %v34_v8 }
  0xdc   :  { %v91_v12 = vpop.f32.mrb[0].mxu0 }
  0xdd   :  { %v92_v13 = vadd.f32 %v91_v12, %v35_v10  ;;  %v183_v14 = vpop.f32.mrb[1].mxu0 }
  0xde   :  { %v94_v16 = vpop.f32.mrb[2].mxu0 }
  0xdf   :  { %v95_v17 = vadd.f32 %v94_v16, %v35_v10  ;;  %v184_v18 = vpop.f32.mrb[3].mxu0  ;;  %v102_v19 = vadd.f32 %v172_v11, %v92_v13 }
  0xe1   :  { %v104_v20 = vsel %vm53_vm1, %v102_v19, 0.0  ;;  %v103_v21 = vadd.f32 %v173_v15, %v95_v17 }
  0xe2   :  { %105 = vadd.xlane.f32.xlu0 %v104_v20 }
  0xe3   :  { %v107_v22 = vsel %vm53_vm1, %v103_v21, 0.0 }
  0xe6   :  { %108 = vadd.xlane.f32.xlu0 %v107_v22 }
 0x16f   :  { %v106_v23 = vpop.xlane.xlu0 %105 }
 0x170   :  { %v111_v24 = vmul.f32 0.03125, %v106_v23 }
 0x172   :  { %v113_v25 = vsub.f32 %v102_v19, %v111_v24 }
 0x173   :  { %v109_v26 = vpop.xlane.xlu0 %108 }
 0x174   :  { %v112_v27 = vmul.f32 0.03125, %v109_v26  ;;  %v115_v28 = vmul.f32 %v113_v25, %v113_v25 }
 0x176   :  { %v114_v29 = vsub.f32 %v103_v21, %v112_v27  ;;  %v117_v30 = vsel %vm53_vm1, %v115_v28, 0.0 }
 0x177   :  { %118 = vadd.xlane.f32.xlu1 %v117_v30 }
 0x178   :  { %v116_v31 = vmul.f32 %v114_v29, %v114_v29 }
 0x17a   :  { %v120_v32 = vsel %vm53_vm1, %v116_v31, 0.0 }
 0x17b   :  { %121 = vadd.xlane.f32.xlu1 %v120_v32 }
 0x204   :  { %v119_v33 = vpop.xlane.xlu1 %118 }
 0x205   :  { %v123_v34 = vmul.f32 0.03125, %v119_v33 }
 0x207   :  { %v125_v35 = vadd.f32 1e-12, %v123_v34 }
 0x208   :  { %v122_v36 = vpop.xlane.xlu1 %121 }
 0x209   :  { %190 = vrsqrt.f32 %v125_v35  ;;  %v124_v37 = vmul.f32 0.03125, %v122_v36 }
 0x20b   :  { %v126_v39 = vadd.f32 1e-12, %v124_v37 }
 0x20d   :  { %192 = vrsqrt.f32 %v126_v39 }
 0x213   :  { %v191_v44 = vpop.eup %190 }
 0x214   :  { %v129_v46 = vmul.f32 %v191_v44, %v113_v25 }
 0x216   :  { %v137_v47 = vmul.f32 %v136_v43, %v129_v46 }
 0x217   :  { %v193_v48 = vpop.eup %192 }
 0x218   :  { %v145_v49 = vadd.f32 %v144_v45, %v137_v47  ;;  %v130_v50 = vmul.f32 %v193_v48, %v114_v29 }
 0x21a   :  { %v168_v51 = vpack.c.bf16 %v145_v49, %v145_v49  ;;  %v138_v52 = vmul.f32 %v136_v43, %v130_v50 }
 0x21c   :  { %156 = vst.msk [vmem:[%s269_s6] sm:$0xf] %vm155_vm2, %v168_v51  ;;  %v146_v53 = vadd.f32 %v144_v45, %v138_v52 }
 0x21e   :  { %v169_v54 = vpack.c.bf16 %v146_v53, %v146_v53 }
 0x220   :  { %157 = vst.msk [vmem:[%s269_s6 + $0x4] sm:$0xf] %vm155_vm2, %v169_v54 }

// kernel: bert_classification_forward.11
= control target key start
LH: loop header
LB: loop body
LE: loop exit
PB: predicated region body
PF: predicated region fallthrough
CT: control target
= control target key end

     0   :  { %v128_v0 = vmov 0.0   ;;  %vm129_vm0 = vmmov 0   ;;  %vm44_vm1 = vcmask 261120   ;;  %v23_v4 = vlaneseq  ;;  %s168_s1 = inlined_call_operand.vmem [shape: bf16[32,96], index: 1, kind: input, shape index: {}]   ;;  %s169_s0 = inlined_call_operand.vmem [shape: bf16[16,32], index: 0, kind: input, shape index: {}]   ;;  %s170_s2 = inlined_call_operand.vmem [shape: bf16[1,96], index: 2, kind: input, shape index: {}]   ;;  %s171_s3 = inlined_call_operand.vmem [shape: bf16[16,96], index: 3, kind: output, shape index: {}]  }
   0x1   :  { %115 = vmatprep.subr.bf16.mxu0 %v128_v0  ;;  %v125_v1 = vld [vmem:[%s168_s1] sm:$0xff]   ;;  %119 = vmatprep.mubr.msk.bf16.mxu0 %vm129_vm0, %v128_v0  ;;  %v126_v2 = vld [vmem:[%s168_s1 + $0x8] sm:$0xff]   ;;  %vm97_vm2 = vcmask 781312  }
   0x2   :  { %116 = vmatpush3.bf16.msra.mxu0 %v125_v1  ;;  %v127_v3 = vld [vmem:[%s169_s0] sm:$0xff]   ;;  %v24_v5 = vshrl.u32 %v23_v4, 7 }
   0x3   :  { %117 = vmatprep.subr.bf16.mxu0 %v128_v0  ;;  %v21_v6 = vld [vmem:[%s170_s2] sm:$0x1] }
   0x4   :  { %v22_v7 = vunpack.c.l.bf16 %v21_v6  ;;  %v25_v8 = vsub.s32 0, %v24_v5 }
   0x6   :  { %118 = vmatpush3.bf16.msra.mxu0 %v126_v2  ;;  %v26_v9 = vrot.slane %v22_v7, %v25_v8 }
   0x9   :  { %120 = vmatmul.mubr.msk.bf16.vlgmr.msra.gmra.mrb[0].mxu0 %vm44_vm1, %v127_v3 }
  0xdc   :  { %v82_v10 = vpop.f32.mrb[0].mxu0 }
  0xdd   :  { %v83_v11 = vadd.f32 %v82_v10, %v26_v9  ;;  %v121_v12 = vpop.f32.mrb[1].mxu0 }
  0xde   :  { %v85_v13 = vpop.f32.mrb[2].mxu0 }
  0xdf   :  { %v110_v14 = vpack.c.bf16 %v83_v11, %v83_v11  ;;  %v86_v15 = vadd.f32 %v85_v13, %v26_v9  ;;  %v122_v16 = vpop.f32.mrb[3].mxu0 }
  0xe1   :  { %98 = vst.msk [vmem:[%s171_s3] sm:$0xf] %vm97_vm2, %v110_v14  ;;  %v111_v17 = vpack.c.bf16 %v86_v15, %v86_v15 }
  0xe3   :  { %99 = vst.msk [vmem:[%s171_s3 + $0x4] sm:$0xf] %vm97_vm2, %v111_v17 }

// kernel: bert_classification_forward.12
= control target key start
LH: loop header
LB: loop body
LE: loop exit
PB: predicated region body
PF: predicated region fallthrough
CT: control target
= control target key end

     0   :  { %s934_s9 = smov 0   ;;  %s936_s10 = smov 0   ;;  %s1046_s0 = inlined_call_operand.vmem [shape: bf16[2,8,96], index: 0, kind: input, shape index: {}]   ;;  %s1047_s1 = inlined_call_operand.vmem [shape: f32[2,1,8], index: 1, kind: input, shape index: {}]   ;;  %s1048_s2 = inlined_call_operand.vmem [shape: bf16[2,8,32], index: 2, kind: output, shape index: {}]  }
   0x1   :  { %s938_s11 = smov 0  }
   0x2 LB: > { %s24_s12 = sadd.s32 1, %s897_s10  ;;  %p742_p0 = scmp.ge.s32.totalorder %s901_s11, 1  ;;  %s901_s11 = sphi %s938_s11, %s12_s11   ;;  %s897_s10 = sphi %s936_s10, %s1050_s10   ;;  %s893_s9 = sphi %s934_s9, %s1049_s9  }
   0x3   : > { %p26_p1 = scmp.ge.s32.totalorder %s24_s12, 2  ;;  %p133_p2 = scmp.lt.s32.totalorder %s901_s11, 3 }
   0x5   : > { %s1052_s12 = smov (%p26_p1, %s24_s12), 0  ;;  %p134_p3 = pnand %p742_p0, %p133_p2 }
   0x6   : > { %p159_p4 = scmp.lt.s32.totalorder (!%p134_p3), %s893_s9, 1  ;;  %v903_v0 = vmov (!%p134_p3), 0.0   ;;  %vm904_vm0 = vmmov (!%p134_p3), 0   ;;  %s905_s17 = smov (!%p134_p3), 96   ;;  %vm195_vm1 = vcmask (!%p134_p3), 64512   ;;  %vm259_vm2 = vcmask (!%p134_p3), 1043456  }
   0x7   : > { %137 = sbr.rel (%p134_p3) target bundleno = 1601 (0x641), region = 28  ;;  %774 = vmatprep.subr.bf16.mxu0 (!%p134_p3), %v903_v0  ;;  %776 = vmatprep.mubr.msk.bf16.mxu0 (!%p134_p3), %vm904_vm0, %v903_v0  ;;  %s906_s18 = smov (!%p134_p3), 64   ;;  %vm649_vm3 = vcmask (!%p134_p3), 130048   ;;  %vm651_vm4 = vcmask (!%p134_p3), 195584   ;;  %vm654_vm5 = vcmask (!%p134_p3), 257024  }
   0x8   : > { %780 = vmatprep.subr.bf16.mxu1 (!%p134_p3), %v903_v0  ;;  %782 = vmatprep.mubr.msk.bf16.mxu1 (!%p134_p3), %vm904_vm0, %v903_v0  ;;  %s907_s19 = smov (!%p134_p3), 88   ;;  %s908_s23 = smov (!%p134_p3), 72  }
   0x9   : > { %s909_s24 = smov (!%p134_p3), 120   ;;  %s910_s25 = smov (!%p134_p3), 80  }
   0xa   : > { %s911_s26 = smov (!%p134_p3), 112   ;;  %s912_s27 = smov (!%p134_p3), 104  }
   0xb   : > { %s913_s28 = smov (!%p134_p3), 56   ;;  %s914_s29 = smov (!%p134_p3), 48  }
   0xc   : > { %s915_s30 = smov (!%p134_p3), 40   ;;  %s916_s3 = smov (!%p134_p3), 8  }
   0xd   : > { %s917_s4 = smov (!%p134_p3), 16   ;;  %s918_s5 = smov (!%p134_p3), 24  }
   0xe   : > { %s1054_s9 = smov (!%p159_p4, %s893_s9), 1 }
   0xf   : > { %s743_s13 = sshll.u32 %s1054_s9, 2  ;;  %s165_s22 = scalar_lea.vmem %s1047_s1, %s1054_s9 }
  0x10   : > { %s162_s16 = scalar_lea.vmem %s1046_s0, %s743_s13  ;;  %v980_v6 = vld [vmem:[%s165_s22] ss:$0 sm:$0xff]  ;;  %s172_s8 = scalar_lea.vmem %s1048_s2, %s743_s13 }
  0x11   : > { %v966_v1 = vld [vmem:[%s162_s16] ss:$0 sps:$4 sm:$0xff]  }
  0x12   : > { %193 = vrot.lane.b32.xlu0 %v966_v1, %s905_s17  ;;  %v180_v4 = vld [vmem:[%s162_s16] sm:$0xf]  ;;  %254 = vrot.lane.b32.xlu1 %v966_v1, %s906_s18 }
  0x13   : > { %v182_v5 = vmul.bf16 1052065461, %v180_v4 }
  0x15   : > { %v749_v20 = vcombine.low %v182_v5, %v182_v5 }
  0x16   : > { %308 = vrot.lane.b32.xlu1 %v966_v1, %s907_s19 }
  0x84   : > { %v194_v2 = vpop.permute.xlu0 %193  ;;  %v255_v13 = vpop.permute.xlu1 %254 }
  0x85   : > { %v200_v3 = vsel %vm195_vm1, %v194_v2, 0  ;;  %v261_v14 = vsel %vm259_vm2, %v255_v13, 0 }
  0x86   : > { %775 = vmatpush3.bf16.xpose.msra.mxu0 %v200_v3  ;;  %781 = vmatpush3.bf16.msra.mxu1 %v261_v14 }
  0x87   : > { %792 = vmatprep.subr.bf16.mxu0 %v903_v0  ;;  %786 = vmatprep.subr.bf16.mxu1 %v903_v0 }
  0x88   : > { %v309_v21 = vpop.permute.xlu1 %308 }
  0x89   : > { %v314_v27 = vsel %vm195_vm1, %v309_v21, 0 }
  0x8d   : > { %777 = vmatmul.mubr.msk.bf16.vlgmr.msra.gmra.mrb[0].mxu0 %vm195_vm1, %v182_v5 }
  0x8e   : > { %794 = vmatprep.mubr.msk.bf16.mxu0 %vm904_vm0, %v903_v0 }
 0x160   : > { %v236_v7 = vpop.f32.mrb[0].mxu0 }
 0x161   : > { %v237_v8 = vadd.f32 %v980_v6, %v236_v7  ;;  %v778_v9 = vpop.f32.mrb[1].mxu0 }
 0x162   : > { %v239_v10 = vpop.f32.mrb[2].mxu0 }
 0x163   : > { %v779_v11 = vpop.f32.mrb[3].mxu0  ;;  %v242_v12 = vsel %vm195_vm1, %v237_v8, -inf }
 0x164   : > { %243 = vmax.xlane.f32.xlu0 %v242_v12 }
 0x17a   : > { %528 = vrot.lane.b32.xlu0 %v966_v1, %s908_s23 }
 0x1f1   : > { %v244_v15 = vpop.xlane.xlu0 %243 }
 0x1f2   : > { %v245_v16 = vsub.f32 %v237_v8, %v244_v15 }
 0x1f4   : > { %v246_v17 = vmul.f32 1.442695, %v245_v16 }
 0x1f5   : > { %v529_v30 = vpop.permute.xlu0 %528 }
 0x1f6   : > { %863 = vpow2.f32 %v246_v17  ;;  %v534_v32 = vsel %vm195_vm1, %v529_v30, 0 }
 0x200   : > { %v864_v18 = vpop.eup %863 }
 0x201   : > { %v248_v19 = vsel %vm195_vm1, %v864_v18, 0.0 }
 0x202   : > { %249 = vadd.xlane.f32.xlu1 %v248_v19 }
 0x213   : > { %306 = vrot.lane.b32.xlu1 %v749_v20, %s909_s24 }
 0x217   : > { %418 = vrot.lane.b32.xlu1 %v966_v1, %s910_s25 }
 0x21b   : > { %416 = vrot.lane.b32.xlu1 %v749_v20, %s911_s26 }
 0x21f   : > { %526 = vrot.lane.b32.xlu1 %v749_v20, %s912_s27 }
 0x28f   : > { %v250_v22 = vpop.xlane.xlu1 %249 }
 0x290   : > { %865 = vrcp.f32 %v250_v22 }
 0x293   : > { %v307_v25 = vpop.permute.xlu1 %306 }
 0x297   : > { %v419_v28 = vpop.permute.xlu1 %418 }
 0x298   : > { %v424_v29 = vsel %vm195_vm1, %v419_v28, 0 }
 0x29a   : > { %v866_v23 = vpop.eup %865 }
 0x29b   : > { %v252_v24 = vmul.f32 %v866_v23, %v864_v18  ;;  %v417_v31 = vpop.permute.xlu1 %416 }
 0x29d   : > { %v253_v26 = vpack.c.bf16 %v252_v24, %v252_v24 }
 0x29f   : > { %783 = vmatmul.mubr.msk.bf16.vlgmr.msra.gmra.mrb[0].mxu1 %vm195_vm1, %v253_v26  ;;  %v527_v33 = vpop.permute.xlu1 %526 }
 0x2a0   : > { %787 = vmatpush3.bf16.xpose.msra.mxu1 %v314_v27  ;;  %788 = vmatprep.mubr.msk.bf16.mxu1 %vm904_vm0, %v903_v0 }
 0x2a1   : > { %798 = vmatprep.subr.bf16.mxu1 %v903_v0 }
 0x2a7   : > { %789 = vmatmul.mubr.msk.bf16.vlgmr.msra.gmra.mrb[4].mxu1 %vm195_vm1, %v307_v25 }
 0x2a8   : > { %799 = vmatpush3.bf16.xpose.msra.mxu1 %v424_v29  ;;  %800 = vmatprep.mubr.msk.bf16.mxu1 %vm904_vm0, %v903_v0 }
 0x2a9   : > { %810 = vmatprep.subr.bf16.mxu1 %v903_v0 }
 0x2af   : > { %801 = vmatmul.mubr.msk.bf16.vlgmr.msra.gmra.mrb[8].mxu1 %vm195_vm1, %v417_v31 }
 0x2b0   : > { %811 = vmatpush3.bf16.xpose.msra.mxu1 %v534_v32  ;;  %812 = vmatprep.mubr.msk.bf16.mxu1 %vm904_vm0, %v903_v0 }
 0x2b7   : > { %813 = vmatmul.mubr.msk.bf16.vlgmr.msra.gmra.mrb[12].mxu1 %vm195_vm1, %v527_v33 }
 0x372   : > { %v1004_v34 = vpop.f32.mrb[0].mxu1 }
 0x373   : > { %v784_v35 = vpop.f32.mrb[1].mxu1 }
 0x374   : > { %v300_v36 = vpop.f32.mrb[2].mxu1 }
 0x375   : > { %v785_v37 = vpop.f32.mrb[3].mxu1 }
 0x37a   : > { %v350_v38 = vpop.f32.mrb[4].mxu1 }
 0x37b   : > { %v351_v39 = vadd.f32 %v980_v6, %v350_v38  ;;  %v790_v40 = vpop.f32.mrb[5].mxu1 }
 0x37c   : > { %v353_v41 = vpop.f32.mrb[6].mxu1 }
 0x37d   : > { %v791_v42 = vpop.f32.mrb[7].mxu1  ;;  %v356_v43 = vsel %vm195_vm1, %v351_v39, -inf }
 0x37e   : > { %357 = vmax.xlane.f32.xlu1 %v356_v43 }
 0x382   : > { %v460_v44 = vpop.f32.mrb[8].mxu1 }
 0x383   : > { %v461_v45 = vadd.f32 %v980_v6, %v460_v44  ;;  %v802_v46 = vpop.f32.mrb[9].mxu1 }
 0x384   : > { %v463_v47 = vpop.f32.mrb[10].mxu1 }
 0x385   : > { %v466_v48 = vsel %vm195_vm1, %v461_v45, -inf  ;;  %v803_v49 = vpop.f32.mrb[11].mxu1 }
 0x386   : > { %467 = vmax.xlane.f32.xlu0 %v466_v48 }
 0x38a   : > { %v570_v50 = vpop.f32.mrb[12].mxu1 }
 0x38b   : > { %v571_v51 = vadd.f32 %v980_v6, %v570_v50  ;;  %v814_v52 = vpop.f32.mrb[13].mxu1 }
 0x38c   : > { %v573_v53 = vpop.f32.mrb[14].mxu1 }
 0x38d   : > { %v576_v54 = vsel %vm195_vm1, %v571_v51, -inf  ;;  %v815_v55 = vpop.f32.mrb[15].mxu1 }
 0x38e   : > { %577 = vmax.xlane.f32.xlu1 %v576_v54 }
 0x40b   : > { %v358_v56 = vpop.xlane.xlu1 %357 }
 0x40c   : > { %v359_v57 = vsub.f32 %v351_v39, %v358_v56 }
 0x40e   : > { %v360_v58 = vmul.f32 1.442695, %v359_v57 }
 0x410   : > { %867 = vpow2.f32 %v360_v58 }
 0x413   : > { %v468_v4 = vpop.xlane.xlu0 %467 }
 0x414   : > { %v469_v5 = vsub.f32 %v461_v45, %v468_v4 }
 0x416   : > { %v470_v6 = vmul.f32 1.442695, %v469_v5 }
 0x41a   : > { %v868_v59 = vpop.eup %867 }
 0x41b   : > { %v578_v60 = vpop.xlane.xlu1 %577  ;;  %v362_v61 = vsel %vm195_vm1, %v868_v59, 0.0 }
 0x41c   : > { %v579_v62 = vsub.f32 %v571_v51, %v578_v60  ;;  %363 = vadd.xlane.f32.xlu1 %v362_v61 }
 0x41e   : > { %v580_v63 = vmul.f32 1.442695, %v579_v62 }
 0x420   : > { %869 = vpow2.f32 %v580_v63 }
 0x421   : > { %871 = vpow2.f32 %v470_v6 }
 0x42a   : > { %v870_v2 = vpop.eup %869 }
 0x42b   : > { %v582_v3 = vsel %vm195_vm1, %v870_v2, 0.0  ;;  %v872_v7 = vpop.eup %871 }
 0x42c   : > { %583 = vadd.xlane.f32.xlu0 %v582_v3  ;;  %v472_v8 = vsel %vm195_vm1, %v872_v7, 0.0 }
 0x42d   : > { %368 = vrot.lane.b32.xlu1 %v966_v1, %s913_s28 }
 0x442   : > { %478 = vrot.lane.b32.xlu0 %v966_v1, %s914_s29 }
 0x451   : > { %473 = vadd.xlane.f32.xlu1 %v472_v8 }
 0x462   : > { %588 = vrot.lane.b32.xlu1 %v966_v1, %s915_s30 }
 0x4a9   : > { %v364_v9 = vpop.xlane.xlu1 %363 }
 0x4aa   : > { %873 = vrcp.f32 %v364_v9 }
 0x4ad   : > { %v369_v10 = vpop.permute.xlu1 %368 }
 0x4ae   : > { %v374_v11 = vsel %vm259_vm2, %v369_v10, 0 }
 0x4af   : > { %793 = vmatpush3.bf16.msra.mxu0 %v374_v11 }
 0x4b0   : > { %804 = vmatprep.subr.bf16.mxu0 %v903_v0 }
 0x4b4   : > { %v874_v12 = vpop.eup %873 }
 0x4b5   : > { %v366_v13 = vmul.f32 %v874_v12, %v868_v59 }
 0x4b7   : > { %v367_v14 = vpack.c.bf16 %v366_v13, %v366_v13 }
 0x4b9   : > { %795 = vmatmul.mubr.msk.bf16.vlgmr.msra.gmra.mrb[4].mxu0 %vm195_vm1, %v367_v14  ;;  %v584_v15 = vpop.xlane.xlu0 %583 }
 0x4ba   : > { %806 = vmatprep.mubr.msk.bf16.mxu0 %vm904_vm0, %v903_v0 }
 0x4bd   : > { %v479_v16 = vpop.permute.xlu0 %478 }
 0x4be   : > { %v484_v1 = vsel %vm259_vm2, %v479_v16, 0 }
 0x4bf   : > { %805 = vmatpush3.bf16.msra.mxu0 %v484_v1 }
 0x4c0   : > { %816 = vmatprep.subr.bf16.mxu0 %v903_v0 }
 0x4de   : > { %v474_v17 = vpop.xlane.xlu1 %473 }
 0x4df   : > { %875 = vrcp.f32 %v474_v17 }
 0x4e0   : > { %877 = vrcp.f32 %v584_v15 }
 0x4e2   : > { %v589_v19 = vpop.permute.xlu1 %588 }
 0x4e3   : > { %v594_v21 = vsel %vm259_vm2, %v589_v19, 0 }
 0x4e9   : > { %v876_v18 = vpop.eup %875 }
 0x4ea   : > { %v476_v20 = vmul.f32 %v876_v18, %v872_v7  ;;  %v878_v23 = vpop.eup %877 }
 0x4eb   : > { %v586_v24 = vmul.f32 %v878_v23, %v870_v2 }
 0x4ec   : > { %v477_v22 = vpack.c.bf16 %v476_v20, %v476_v20 }
 0x4ed   : > { %v587_v25 = vpack.c.bf16 %v586_v24, %v586_v24 }
 0x4ee   : > { %807 = vmatmul.mubr.msk.bf16.vlgmr.msra.gmra.mrb[8].mxu0 %vm195_vm1, %v477_v22 }
 0x4ef   : > { %817 = vmatpush3.bf16.msra.mxu0 %v594_v21  ;;  %818 = vmatprep.mubr.msk.bf16.mxu0 %vm904_vm0, %v903_v0 }
 0x4f6   : > { %819 = vmatmul.mubr.msk.bf16.vlgmr.msra.gmra.mrb[12].mxu0 %vm195_vm1, %v587_v25 }
 0x58c   : > { %v410_v26 = vpop.f32.mrb[4].mxu0 }
 0x58d   : > { %637 = vrot.lane.b32.xlu1 %v410_v26, %s916_s3  ;;  %v796_v27 = vpop.f32.mrb[5].mxu0 }
 0x58e   : > { %v413_v28 = vpop.f32.mrb[6].mxu0 }
 0x58f   : > { %v797_v29 = vpop.f32.mrb[7].mxu0 }
 0x5c1   : > { %v520_v30 = vpop.f32.mrb[8].mxu0 }
 0x5c2   : > { %641 = vrot.lane.b32.xlu0 %v520_v30, %s917_s4  ;;  %v808_v31 = vpop.f32.mrb[9].mxu0 }
 0x5c3   : > { %v523_v32 = vpop.f32.mrb[10].mxu0 }
 0x5c4   : > { %v809_v33 = vpop.f32.mrb[11].mxu0 }
 0x5c9   : > { %v630_v35 = vpop.f32.mrb[12].mxu0 }
 0x5ca   : > { %645 = vrot.lane.b32.xlu1 %v630_v35, %s918_s5  ;;  %v820_v0 = vpop.f32.mrb[13].mxu0 }
 0x5cb   : > { %v633_v36 = vpop.f32.mrb[14].mxu0 }
 0x5cc   : > { %v821_v37 = vpop.f32.mrb[15].mxu0 }
 0x5ff   : > { %v638_v38 = vpop.permute.xlu1 %637 }
 0x600   : > { %v648_v40 = vsel %vm195_vm1, %v1004_v34, %v638_v38 }
 0x634   : > { %v642_v39 = vpop.permute.xlu0 %641 }
 0x635   : > { %v650_v41 = vsel %vm649_vm3, %v648_v40, %v642_v39 }
 0x63c   : > { %v646_v42 = vpop.permute.xlu1 %645 }
 0x63d   : > { %v652_v43 = vsel %vm651_vm4, %v650_v41, %v646_v42 }
 0x63e   : > { %v653_v44 = vpack.c.bf16 %v652_v43, %v652_v43 }
 0x640   : > { %655 = vst.msk [vmem:[%s172_s8] sm:$0xf] %vm654_vm5, %v653_v44 }
 0x641 PF: > { %s12_s11 = sadd.s32 1, %s901_s11   ;;  %s1049_s9 = smov %s897_s10 }
 0x642   : > { %p9_p5 = scmp.ge.s32.totalorder %s12_s11, 4   ;;  %s1050_s10 = smov %s1052_s12 }
 0x644   :  { %11 = sbr.rel (!%p9_p5) target bundleno = 2 (0x2), region = 62 }

// kernel: bert_classification_forward.19
= control target key start
LH: loop header
LB: loop body
LE: loop exit
PB: predicated region body
PF: predicated region fallthrough
CT: control target
= control target key end

     0   :  { %v141_v1 = vmov 0.0   ;;  %vm142_vm0 = vmmov 0   ;;  %s188_s0 = inlined_call_operand.vmem [shape: bf16[2,32], index: 0, kind: input, shape index: {}]   ;;  %s189_s1 = inlined_call_operand.vmem [shape: bf16[32,128], index: 1, kind: input, shape index: {}]   ;;  %s190_s2 = inlined_call_operand.vmem [shape: bf16[1,128], index: 2, kind: input, shape index: {}]   ;;  %s191_s3 = inlined_call_operand.hbm [shape: f32[2,128], index: 3, kind: output, shape index: {}]  }
   0x1   :  { %v115_v0 = vld [vmem:[%s189_s1] sm:$0xff]   ;;  %104 = vmatprep.subr.bf16.mxu0 %v141_v1  ;;  %v116_v2 = vld [vmem:[%s189_s1 + $0x8] sm:$0xff]   ;;  %108 = vmatprep.mubr.msk.bf16.mxu0 %vm142_vm0, %v141_v1 }
   0x2   :  { %105 = vmatpush3.bf16.msra.mxu0 %v115_v0 }
   0x3   :  { %106 = vmatprep.subr.bf16.mxu0 %v141_v1 }
   0x4   :  { %8 = vsyncpa [#allocation3], 0  ;;  %v16_v3 = vld [vmem:[%s188_s0] sm:$0x1]  ;;  %vm39_vm1 = vcmask 261120   ;;  %v23_v4 = vlaneseq  ;;  %s143_s1 = smov [#allocation2]  }
   0x5   :  { %v21_v6 = vld [vmem:[%s190_s2] sm:$0x1]  ;;  %s90_s20 = sshll.u32 %s143_s1, 4  ;;  %s91_s20 = int_to_ptr.vmem [resolvable:$true] %s90_s20 }
   0x6   :  { %107 = vmatpush3.bf16.msra.mxu0 %v116_v2  ;;  %v24_v5 = vshrl.u32 %v23_v4, 7  ;;  %v22_v7 = vunpack.c.l.bf16 %v21_v6  ;;  %s117_s0 = scalar_lea.vmem %s91_s20, 32  ;;  %p122_p1 = scmp.lt.s32.totalorder %s91_s20, %s91_s20 }
   0x7   :  { %p118_p0 = scmp.ne.s32.totalorder %s91_s20, %s117_s0  ;;  %p123_p2 = scmp.lt.s32.totalorder %s117_s0, %s117_s0 }
   0x8   :  { %v25_v8 = vsub.s32 0, %v24_v5 }
   0x9   :  { %109 = vmatmul.mubr.msk.bf16.vlgmr.msra.gmra.mrb[0].mxu0 %vm39_vm1, %v16_v3  ;;  %p124_p3 = por %p123_p2, %p122_p1 }
   0xa   :  { %v26_v9 = vrot.slane %v22_v7, %v25_v8 }
   0xb   :  { %p125_p4 = pnand %p124_p3, %p118_p0 }
  0xdc   :  { %v77_v10 = vpop.f32.mrb[0].mxu0 }
  0xdd   :  { %v78_v11 = vadd.f32 %v77_v10, %v26_v9  ;;  %v110_v12 = vpop.f32.mrb[1].mxu0 }
  0xde   :  { %v80_v13 = vpop.f32.mrb[2].mxu0 }
  0xdf   :  { %83 = vst [vmem:[#allocation2] sm:$0x3] %v78_v11  ;;  %v111_v14 = vpop.f32.mrb[3].mxu0 }
  0xe0   :  { %128 = shalt.err (!%p125_p4)
}
  0xe1   :  { %s129_s22 = scalar_lea.hbm %s191_s3, 32 }
  0xe2   :  { %p130_p5 = scmp.ne.s32.totalorder %s191_s3, %s129_s22  ;;  %p133_p6 = scmp.lt.u32.totalorder %s129_s22, %s191_s3 }
  0xe4   :  { %p135_p7 = pnand %p133_p6, %p130_p5 }
  0xe6   :  { %138 = shalt.err (!%p135_p7)
}
  0xe7   :  { %93 = dma.vmem_to_hbm [thread:$0]  %s91_s20, 32, %s191_s3, [#allocation3]  }
  0xe8   :  { %139 = dma.done.wait [#allocation3], 32  }
  0xe9   :  { %140 = vsyncadd [#allocation3], 4294967264 }
  0xea   :  { %97 = vsyncpa [#allocation3], 1 }

// kernel: bert_classification_forward.14
= control target key start
LH: loop header
LB: loop body
LE: loop exit
PB: predicated region body
PF: predicated region fallthrough
CT: control target
= control target key end

     0   :  { %v324_v0 = vmov 0.0   ;;  %vm325_vm0 = vmmov 0   ;;  %vm56_vm1 = vcmask 261120   ;;  %v35_v8 = vlaneseq  ;;  %s421_s1 = inlined_call_operand.vmem [shape: bf16[32,64], index: 1, kind: input, shape index: {}]   ;;  %s422_s0 = inlined_call_operand.vmem [shape: bf16[16,32], index: 0, kind: input, shape index: {}]   ;;  %s423_s3 = inlined_call_operand.vmem [shape: bf16[64,32], index: 3, kind: input, shape index: {}]   ;;  %s424_s2 = inlined_call_operand.vmem [shape: bf16[1,64], index: 2, kind: input, shape index: {}]   ;;  %s425_s4 = inlined_call_operand.vmem [shape: bf16[1,32], index: 4, kind: input, shape index: {}]   ;;  %s426_s5 = inlined_call_operand.vmem [shape: bf16[1,32], index: 5, kind: input, shape index: {}]   ;;  %s427_s6 = inlined_call_operand.vmem [shape: bf16[1,32], index: 6, kind: input, shape index: {}]   ;;  %s428_s7 = inlined_call_operand.vmem [shape: bf16[16,32], index: 7, kind: output, shape index: {}]  }
   0x1   :  { %286 = vmatprep.subr.bf16.mxu0 %v324_v0  ;;  %v308_v1 = vld [vmem:[%s421_s1] sm:$0xff]   ;;  %290 = vmatprep.mubr.msk.bf16.mxu0 %vm325_vm0, %v324_v0  ;;  %v309_v2 = vld [vmem:[%s421_s1 + $0x8] sm:$0xff]   ;;  %v313_v6 = vld [vmem:[%s423_s3 + $0x10] sm:$0xff]   ;;  %vm158_vm2 = vcmask 523264   ;;  %vm258_vm3 = vcmask 257024  }
   0x2   :  { %294 = vmatprep.subr.bf16.mxu1 %v324_v0  ;;  %302 = vmatprep.mubr.msk.bf16.mxu1 %vm325_vm0, %v324_v0  ;;  %v375_v3 = vld [vmem:[%s422_s0] sm:$0xff]   ;;  %v312_v5 = vld [vmem:[%s423_s3 + $0x8] sm:$0xff]   ;;  %v314_v7 = vld [vmem:[%s423_s3 + $0x18] sm:$0xff]   ;;  %v36_v9 = vshrl.u32 %v35_v8, 7 }
   0x3   :  { %287 = vmatpush3.bf16.msra.mxu0 %v308_v1  ;;  %v311_v4 = vld [vmem:[%s423_s3] sm:$0xff]   ;;  %v203_v42 = vunpack.c.l.bf16 %v375_v3  ;;  %v204_v46 = vunpack.c.h.bf16 %v375_v3 }
   0x4   :  { %288 = vmatprep.subr.bf16.mxu0 %v324_v0  ;;  %295 = vmatpush3.bf16.msra.mxu1 %v311_v4  ;;  %v33_v10 = vld [vmem:[%s424_s2] sm:$0x1]  ;;  %v394_v12 = vsub.s32 0, %v36_v9 }
   0x5   :  { %296 = vmatprep.subr.bf16.mxu1 %v324_v0  ;;  %v34_v11 = vunpack.c.l.bf16 %v33_v10  ;;  %v128_v39 = vld [vmem:[%s425_s4] sm:$0x1] }
   0x6   :  { %v129_v40 = vunpack.c.l.bf16 %v128_v39 }
   0x7   :  { %289 = vmatpush3.bf16.msra.mxu0 %v309_v2  ;;  %v38_v13 = vrot.slane %v34_v11, %v394_v12 }
   0x8   :  { %297 = vmatpush3.bf16.msra.mxu1 %v312_v5  ;;  %v133_v41 = vrot.slane %v129_v40, %v394_v12  ;;  %v234_v5 = vld [vmem:[%s426_s5] sm:$0x1] }
   0x9   :  { %298 = vmatprep.subr.bf16.mxu1 %v324_v0  ;;  %v235_v8 = vunpack.c.l.bf16 %v234_v5 }
   0xa   :  { %291 = vmatmul.mubr.msk.bf16.vlgmr.msra.gmra.mrb[0].mxu0 %vm56_vm1, %v375_v3 }
   0xb   :  { %v239_v10 = vrot.slane %v235_v8, %v394_v12 }
   0xc   :  { %299 = vmatpush3.bf16.msra.mxu1 %v313_v6 }
   0xd   :  { %300 = vmatprep.subr.bf16.mxu1 %v324_v0 }
  0x10   :  { %301 = vmatpush3.bf16.msra.mxu1 %v314_v7  ;;  %v242_v7 = vld [vmem:[%s427_s6] sm:$0x1] }
  0x11   :  { %v243_v9 = vunpack.c.l.bf16 %v242_v7 }
  0xdd   :  { %v94_v14 = vpop.f32.mrb[0].mxu0 }
  0xde   :  { %v95_v15 = vadd.f32 %v94_v14, %v38_v13  ;;  %v292_v16 = vpop.f32.mrb[1].mxu0 }
  0xdf   :  { %v97_v17 = vpop.f32.mrb[2].mxu0 }
  0xe0   :  { %v103_v18 = vmul.f32 0.044715, %v95_v15  ;;  %v98_v19 = vadd.f32 %v97_v17, %v38_v13  ;;  %v293_v20 = vpop.f32.mrb[3].mxu0  ;;  %v101_v33 = vmul.f32 0.5, %v95_v15  ;;  %v247_v13 = vrot.slane %v243_v9, %v394_v12 }
  0xe2   :  { %v105_v21 = vmul.f32 %v103_v18, %v95_v15  ;;  %v104_v22 = vmul.f32 0.044715, %v98_v19  ;;  %v102_v34 = vmul.f32 0.5, %v98_v19 }
  0xe4   :  { %v107_v23 = vmul.f32 %v105_v21, %v95_v15  ;;  %v106_v24 = vmul.f32 %v104_v22, %v98_v19 }
  0xe6   :  { %v109_v25 = vadd.f32 %v107_v23, %v95_v15  ;;  %v108_v26 = vmul.f32 %v106_v24, %v98_v19 }
  0xe8   :  { %v111_v27 = vmul.f32 0.7978846, %v109_v25  ;;  %v110_v28 = vadd.f32 %v108_v26, %v98_v19 }
  0xea   :  { %316 = vtanh.f32 %v111_v27  ;;  %v112_v29 = vmul.f32 0.7978846, %v110_v28 }
  0xec   :  { %318 = vtanh.f32 %v112_v29 }
  0xf4   :  { %v317_v30 = vpop.eup %316 }
  0xf5   :  { %v115_v31 = vadd.f32 1.0, %v317_v30 }
  0xf6   :  { %v319_v32 = vpop.eup %318 }
  0xf7   :  { %v116_v35 = vadd.f32 1.0, %v319_v32  ;;  %v117_v36 = vmul.f32 %v115_v31, %v101_v33 }
  0xf9   :  { %v118_v37 = vmul.f32 %v116_v35, %v102_v34 }
  0xfb   :  { %v119_v38 = vpack.c.bf16 %v118_v37, %v117_v36 }
  0xfd   :  { %303 = vmatmul.mubr.msk.bf16.vlgmr.msra.gmra.mrb[0].mxu1 %vm158_vm2, %v119_v38 }
 0x1d0   :  { %v196_v43 = vpop.f32.mrb[0].mxu1 }
 0x1d1   :  { %v197_v44 = vadd.f32 %v196_v43, %v133_v41  ;;  %v304_v45 = vpop.f32.mrb[1].mxu1 }
 0x1d2   :  { %v199_v47 = vpop.f32.mrb[2].mxu1 }
 0x1d3   :  { %v200_v48 = vadd.f32 %v199_v47, %v133_v41  ;;  %v305_v49 = vpop.f32.mrb[3].mxu1  ;;  %v205_v50 = vadd.f32 %v203_v42, %v197_v44 }
 0x1d5   :  { %v207_v51 = vsel %vm56_vm1, %v205_v50, 0.0  ;;  %v206_v52 = vadd.f32 %v204_v46, %v200_v48 }
 0x1d6   :  { %208 = vadd.xlane.f32.xlu0 %v207_v51 }
 0x1d7   :  { %v210_v53 = vsel %vm56_vm1, %v206_v52, 0.0 }
 0x1da   :  { %211 = vadd.xlane.f32.xlu0 %v210_v53 }
 0x263   :  { %v209_v54 = vpop.xlane.xlu0 %208 }
 0x264   :  { %v214_v55 = vmul.f32 0.03125, %v209_v54 }
 0x266   :  { %v216_v56 = vsub.f32 %v205_v50, %v214_v55 }
 0x267   :  { %v212_v57 = vpop.xlane.xlu0 %211 }
 0x268   :  { %v215_v58 = vmul.f32 0.03125, %v212_v57  ;;  %v218_v59 = vmul.f32 %v216_v56, %v216_v56 }
 0x26a   :  { %v217_v60 = vsub.f32 %v206_v52, %v215_v58  ;;  %v220_v61 = vsel %vm56_vm1, %v218_v59, 0.0 }
 0x26b   :  { %221 = vadd.xlane.f32.xlu1 %v220_v61 }
 0x26c   :  { %v219_v62 = vmul.f32 %v217_v60, %v217_v60 }
 0x26e   :  { %v223_v63 = vsel %vm56_vm1, %v219_v62, 0.0 }
 0x26f   :  { %224 = vadd.xlane.f32.xlu1 %v223_v63 }
 0x2f8   :  { %v222_v0 = vpop.xlane.xlu1 %221 }
 0x2f9   :  { %v226_v1 = vmul.f32 0.03125, %v222_v0 }
 0x2fb   :  { %v228_v2 = vadd.f32 1e-12, %v226_v1 }
 0x2fc   :  { %v225_v3 = vpop.xlane.xlu1 %224 }
 0x2fd   :  { %320 = vrsqrt.f32 %v228_v2  ;;  %v227_v4 = vmul.f32 0.03125, %v225_v3 }
 0x2ff   :  { %v229_v6 = vadd.f32 1e-12, %v227_v4 }
 0x301   :  { %322 = vrsqrt.f32 %v229_v6 }
 0x307   :  { %v321_v11 = vpop.eup %320 }
 0x308   :  { %v232_v14 = vmul.f32 %v321_v11, %v216_v56 }
 0x30a   :  { %v240_v15 = vmul.f32 %v239_v10, %v232_v14 }
 0x30b   :  { %v323_v16 = vpop.eup %322 }
 0x30c   :  { %v248_v17 = vadd.f32 %v247_v13, %v240_v15  ;;  %v233_v18 = vmul.f32 %v323_v16, %v217_v60 }
 0x30e   :  { %v276_v19 = vpack.c.bf16 %v248_v17, %v248_v17  ;;  %v241_v20 = vmul.f32 %v239_v10, %v233_v18 }
 0x310   :  { %259 = vst.msk [vmem:[%s428_s7] sm:$0xf] %vm258_vm3, %v276_v19  ;;  %v249_v21 = vadd.f32 %v247_v13, %v241_v20 }
 0x312   :  { %v277_v22 = vpack.c.bf16 %v249_v21, %v249_v21 }
 0x314   :  { %260 = vst.msk [vmem:[%s428_s7 + $0x4] sm:$0xf] %vm258_vm3, %v277_v22 }

</bundles_post_ra>
